<compile_context>
chip_gen: v6e
topology: v6e:2x2x1
jax: 0.10.0
libtpu: 0.0.40
codegen_flags: <defaults>
</compile_context>

<pallas_src>
import functools
import math

import jax
import jax.numpy as jnp
from jax.experimental import pallas as pl
from jax.experimental.pallas import tpu as pltpu

INF = 32752.0     # legacy module fills masked scores with +INF (sic)
LN_EPS = 1e-6

# rows of the packed (9, D) small-parameter operand
_BQ, _BK, _BV, _BO, _B2, _LN1G, _LN1B, _LN2G, _LN2B = range(9)


def _layernorm(x, gain, bias, approx_recip):
    """gain * (x - mean) / (unbiased_std + eps) + bias (matches legacy module)."""
    d = x.shape[-1]
    mean = jnp.mean(x, axis=-1, keepdims=True)
    var = jnp.sum((x - mean) ** 2, axis=-1, keepdims=True) * (1.0 / (d - 1))
    inv = pl.reciprocal(jnp.sqrt(var) + LN_EPS, approx=approx_recip)
    return gain * (x - mean) * inv + bias


def _gelu_exact(x):
    return 0.5 * x * (1.0 + jax.lax.erf(x * (1.0 / math.sqrt(2.0))))


def encoder_layer_kernel(
    q_ref, k_ref, v_ref, mask_ref,
    wq_ref, wk_ref, wv_ref, wo_ref, w1_ref, w2_ref,
    b1_ref, pvec_ref,
    out_ref,
    *, num_heads, compute_dtype, approx_recip):
    bb, L, D = q_ref.shape
    H = num_heads
    dh = D // H
    M = bb * L
    cdt = compute_dtype

    # Packed small parameters: one (9, D) f32 block, sliced statically.
    pv = pvec_ref[...]
    bq = pv[_BQ:_BQ + 1]      # already scaled by 1/sqrt(d_head) in the wrapper
    bk = pv[_BK:_BK + 1]
    bv = pv[_BV:_BV + 1]
    bo = pv[_BO:_BO + 1]
    b2 = pv[_B2:_B2 + 1]
    ln1_g, ln1_b = pv[_LN1G:_LN1G + 1], pv[_LN1B:_LN1B + 1]
    ln2_g, ln2_b = pv[_LN2G:_LN2G + 1], pv[_LN2B:_LN2B + 1]

    # Flatten (bb, L, D) -> (bb*L, D): one lane-dense operand for every
    # projection / FFN matmul, independent of how many batch rows are packed.
    q2d = q_ref[...].reshape(M, D)            # f32 (kept for the residual)
    k2d = k_ref[...].reshape(M, D)
    v2d = v_ref[...].reshape(M, D)

    def proj(x2d, w_ref, b):
        acc = jnp.dot(x2d.astype(cdt), w_ref[...],
                      preferred_element_type=jnp.float32) + b
        return acc.astype(cdt)

    qp = proj(q2d, wq_ref, bq)                # (M, D); 1/sqrt(dh) folded in
    kp = proj(k2d, wk_ref, bk)
    vp = proj(v2d, wv_ref, bv)

    # Heads: lanes -> leading batch axis.  (M, D) -> (H*bb, L, dh) with
    # g = h*bb + b.  Static lane slices + leading-axis concat (no VMEM stores,
    # no per-head matmul/softmax code).
    def split_heads(x2d):
        x3 = x2d.reshape(bb, L, D)
        return jnp.concatenate(
            [x3[:, :, h * dh:(h + 1) * dh] for h in range(H)], axis=0)

    qg = split_heads(qp)                      # (H*bb, L, dh) compute dtype
    kg = split_heads(kp)
    vg = split_heads(vp)

    # One batched contraction for ALL heads (single batch dim), then one
    # mask + softmax pass on the whole (H*bb, L, L) tensor.
    s = jnp.einsum("gqd,gkd->gqk", qg, kg,
                   preferred_element_type=jnp.float32)        # f32 scores
    masked = mask_ref[...] != 0                                # (bb, L, L) bool
    masked_g = jnp.broadcast_to(masked[None], (H, bb, L, L)).reshape(H * bb, L, L)
    # legacy semantics: masked_fill(mask, +INF)  (sic — not -INF)
    s = jnp.where(masked_g, INF, s)
    s = s - jnp.max(s, axis=-1, keepdims=True)
    e = jnp.exp(s)
    attn = (e * pl.reciprocal(jnp.sum(e, axis=-1, keepdims=True),
                              approx=approx_recip)).astype(cdt)

    ctx_g = jnp.einsum("gqk,gkd->gqd", attn, vg,
                       preferred_element_type=jnp.float32).astype(cdt)

    # Heads back to lanes (h-major, matching the torch reshape), then one
    # full-K (M, D) @ (D, D) matmul with Wo.
    ctx = jnp.concatenate(
        [ctx_g[h * bb:(h + 1) * bb].reshape(M, dh) for h in range(H)], axis=-1)
    attn_out = jnp.dot(ctx, wo_ref[...],
                       preferred_element_type=jnp.float32) + bo

    # Sublayer 1: residual + LayerNorm (f32).
    x = _layernorm(attn_out + q2d, ln1_g, ln1_b, approx_recip)

    # Pointwise FFN: Linear -> exact GELU -> Linear.
    h1 = jnp.dot(x.astype(cdt), w1_ref[...],
                 preferred_element_type=jnp.float32) + b1_ref[...]
    h1 = _gelu_exact(h1).astype(cdt)          # halve the largest live tensor
    h2 = jnp.dot(h1, w2_ref[...], preferred_element_type=jnp.float32) + b2

    # Sublayer 2: residual + LayerNorm.
    y = _layernorm(h2 + x, ln2_g, ln2_b, approx_recip)
    out_ref[...] = y.reshape(bb, L, D).astype(out_ref.dtype)


def _vmem_limit_bytes():
    """~100 MiB on v5e/v6e (128 MiB physical), ~56 MiB on v7x (64 MiB)."""
    try:
        cap = int(pltpu.get_tpu_info().vmem_capacity_bytes)
    except Exception:       # pragma: no cover — conservative, works everywhere
        cap = 64 * 1024 * 1024
    return max(32 * 1024 * 1024, min(cap - 8 * 1024 * 1024, 100 * 1024 * 1024))


def _pick_block_b(B, L):
    """Largest batch-rows-per-step such that (a) at least 2 grid steps remain
    when B >= 2 (v7x has 2 TensorCores; a 1-step 'parallel' grid idles one) and
    (b) the MXU M dimension block_b*L stays <= 1024 (VMEM / pipeline balance)."""
    best = 1
    for bb in range(1, B + 1):
        if B % bb:
            continue
        if B >= 2 and B // bb < 2:
            continue
        if bb * L > 1024:
            continue
        best = bb
    return best


@functools.lru_cache(maxsize=None)
def _build(cfg, single_buffer):
    """Build (and cache) the jitted fused-layer callable for a static config."""
    B, L, D, F, H, block_b, cdt_name = cfg
    cdt = jnp.dtype(cdt_name)
    approx = cdt.itemsize < 4   # approx EUP reciprocal only in low-precision path
    nsteps = B // block_b
    scale = 1.0 / math.sqrt(D // H)

    kernel = functools.partial(encoder_layer_kernel, num_heads=H,
                               compute_dtype=cdt, approx_recip=approx)

    def wspec(shape):
        # Grid-invariant operands: single-buffer them so they are not
        # pointlessly double-buffered in VMEM (headroom on v7x's 64 MiB).
        nd = len(shape)
        if single_buffer:
            return pl.BlockSpec(shape, lambda *_: (0,) * nd,
                                pipeline_mode=pl.Buffered(1))
        return pl.BlockSpec(shape, lambda *_: (0,) * nd)

    seq_spec = pl.BlockSpec((block_b, L, D), lambda b: (b, 0, 0))
    mask_spec = pl.BlockSpec((block_b, L, L), lambda b: (b, 0, 0))

    flops = int(2 * B * L * (4 * D * D + 2 * L * D + 2 * D * F))
    transcendentals = int(B * L * (H * L + F))
    bytes_accessed = int(
        4 * (4 * B * L * D)                            # q/k/v in + out (f32)
        + B * L * L                                    # int8 mask
        + cdt.itemsize * (4 * D * D + 2 * D * F)       # weight matrices
        + 4 * (9 * D + F))                             # packed biases + LN + b1
    cost = pl.CostEstimate(flops=flops, transcendentals=transcendentals,
                           bytes_accessed=bytes_accessed)

    grid_fn = pl.pallas_call(
        kernel,
        out_shape=jax.ShapeDtypeStruct((B, L, D), jnp.float32),
        grid_spec=pltpu.PrefetchScalarGridSpec(
            num_scalar_prefetch=0,
            grid=(nsteps,),
            in_specs=[
                seq_spec, seq_spec, seq_spec, mask_spec,
                wspec((D, D)), wspec((D, D)), wspec((D, D)), wspec((D, D)),
                wspec((D, F)), wspec((F, D)),
                wspec((1, F)),        # b1
                wspec((9, D)),        # packed bq*scale, bk, bv, bo, b2, LN params
            ],
            out_specs=pl.BlockSpec((block_b, L, D), lambda b: (b, 0, 0)),
        ),
        compiler_params=pltpu.CompilerParams(
            dimension_semantics=("parallel",),      # shards across v7x's 2 TCs
            vmem_limit_bytes=_vmem_limit_bytes()),
        cost_estimate=cost,
    )

    @jax.jit
    def run(query, key, value, mask,
            wq, bq, wk, bk, wv, bv, wo, bo, ln1_g, ln1_b,
            w1, b1, w2, b2, ln2_g, ln2_b):
        # 1/sqrt(d_head) folded into the query projection; weights cast once
        # (inside this cached jit) to the MXU compute dtype.
        wq_c = (wq * scale).astype(cdt)
        wk_c = wk.astype(cdt); wv_c = wv.astype(cdt); wo_c = wo.astype(cdt)
        w1_c = w1.astype(cdt); w2_c = w2.astype(cdt)
        pvec = jnp.concatenate(
            [bq * scale, bk, bv, bo, b2, ln1_g, ln1_b, ln2_g, ln2_b], axis=0)
        mask_i8 = (mask != 0).astype(jnp.int8)   # 1 bit of info -> 4x less DMA
        return grid_fn(query, key, value, mask_i8,
                       wq_c, wk_c, wv_c, wo_c, w1_c, w2_c, b1, pvec)

    return run


_SINGLE_BUFFER_OK = None   # Buffered(1) capability, resolved once on first call


def transformer_encoder_layer(query, key, value, mask, params, *, num_heads,
                              block_b=None, compute_dtype=jnp.bfloat16):
    """Fused TransformerEncoderLayer forward.

    query/key/value: (B, L, D) float32; mask: (B, L, L), nonzero == masked.
    Weights are (in_features, out_features); dropout_prob == 0 (identity).
    Returns the layer output asynchronously (no host sync).
    """
    global _SINGLE_BUFFER_OK
    B, L, D = query.shape
    F = params["w1"].shape[1]
    if block_b is None:
        block_b = _pick_block_b(B, L)
    assert D % num_heads == 0 and B % block_b == 0
    cfg = (B, L, D, F, num_heads, block_b, jnp.dtype(compute_dtype).name)
    args = (query, key, value, mask,
            params["wq"], params["bq"], params["wk"], params["bk"],
            params["wv"], params["bv"], params["wo"], params["bo"],
            params["ln1_g"], params["ln1_b"],
            params["w1"], params["b1"], params["w2"], params["b2"],
            params["ln2_g"], params["ln2_b"])
    if _SINGLE_BUFFER_OK is None:
        try:                                    # one-time capability probe
            out = _build(cfg, True)(*args)
            _SINGLE_BUFFER_OK = True
            return out
        except Exception:                       # jax w/o Buffered(1) support
            _SINGLE_BUFFER_OK = False
    return _build(cfg, _SINGLE_BUFFER_OK)(*args)


# -------------------- pure-JAX reference (for correctness check) -------------
def reference(query, key, value, mask, params, *, num_heads):
    B, L, D = query.shape
    dh = D // num_heads

    def ln(x, g, b):
        mean = jnp.mean(x, axis=-1, keepdims=True)
        var = jnp.sum((x - mean) ** 2, axis=-1, keepdims=True) / (D - 1)
        return g * (x - mean) / (jnp.sqrt(var) + LN_EPS) + b

    qp = query @ params["wq"] + params["bq"]
    kp = key @ params["wk"] + params["bk"]
    vp = value @ params["wv"] + params["bv"]
    qh = qp.reshape(B, L, num_heads, dh).transpose(0, 2, 1, 3)
    kh = kp.reshape(B, L, num_heads, dh).transpose(0, 2, 1, 3)
    vh = vp.reshape(B, L, num_heads, dh).transpose(0, 2, 1, 3)
    scores = jnp.einsum("bhqd,bhkd->bhqk", qh, kh) / math.sqrt(dh)
    scores = jnp.where(mask[:, None, :, :] > 0.5, INF, scores)
    attn = jax.nn.softmax(scores, axis=-1)
    ctx = jnp.einsum("bhqk,bhkd->bhqd", attn, vh)
    ctx = ctx.transpose(0, 2, 1, 3).reshape(B, L, D)
    attn_out = ctx @ params["wo"] + params["bo"]
    x = ln(attn_out + query, params["ln1_g"], params["ln1_b"])
    h1 = x @ params["w1"] + params["b1"]
    h1 = 0.5 * h1 * (1.0 + jax.lax.erf(h1 / math.sqrt(2.0)))
    h2 = h1 @ params["w2"] + params["b2"]
    return ln(h2 + x, params["ln2_g"], params["ln2_b"])


if __name__ == "__main__":
    B, L, D, H, F = 2, 8, 32, 4, 64

    key0 = jax.random.PRNGKey(0)
    ks = jax.random.split(key0, 16)

    def lin(kw, din, dout):
        bound = 1.0 / math.sqrt(din)
        w = jax.random.uniform(kw, (din, dout), jnp.float32, -bound, bound)
        b = jax.random.uniform(jax.random.fold_in(kw, 1), (1, dout),
                               jnp.float32, -bound, bound)
        return w, b

    wq, bq = lin(ks[0], D, D)
    wk, bk = lin(ks[1], D, D)
    wv, bv = lin(ks[2], D, D)
    wo, bo = lin(ks[3], D, D)
    w1, b1 = lin(ks[4], D, F)
    w2, b2 = lin(ks[5], F, D)
    params = dict(
        wq=wq, bq=bq, wk=wk, bk=bk, wv=wv, bv=bv, wo=wo, bo=bo,
        w1=w1, b1=b1, w2=w2, b2=b2,
        ln1_g=jnp.ones((1, D), jnp.float32), ln1_b=jnp.zeros((1, D), jnp.float32),
        ln2_g=jnp.ones((1, D), jnp.float32), ln2_b=jnp.zeros((1, D), jnp.float32),
    )

    query = jax.random.normal(ks[6], (B, L, D), jnp.float32)
    key_t = jax.random.normal(ks[7], (B, L, D), jnp.float32)
    value = jax.random.normal(ks[8], (B, L, D), jnp.float32)
    # sources_mask: nonzero = masked position (same role as the torch bool mask)
    mask = jax.random.bernoulli(ks[9], 0.25, (B, L, L)).astype(jnp.float32)

    ref = reference(query, key_t, value, mask, params, num_heads=H)

    # 1) exact f32 path, one batch row per grid step -> strict check
    out_f32 = transformer_encoder_layer(query, key_t, value, mask, params,
                                        num_heads=H, block_b=1,
                                        compute_dtype=jnp.float32)
    assert out_f32.shape == (B, L, D)
    assert jnp.allclose(out_f32, ref, atol=1e-4, rtol=1e-4), (
        float(jnp.max(jnp.abs(out_f32 - ref))))

    # 2) exact f32 path with both batch rows packed into a single grid step
    #    (exercises the flattened / head-batched path with bb > 1)
    out_f32_b2 = transformer_encoder_layer(query, key_t, value, mask, params,
                                           num_heads=H, block_b=2,
                                           compute_dtype=jnp.float32)
    assert jnp.allclose(out_f32_b2, ref, atol=1e-4, rtol=1e-4), (
        float(jnp.max(jnp.abs(out_f32_b2 - ref))))

    # 3) performance path: bf16 MXU operands, f32 accumulate / softmax / LN,
    #    auto block_b (keeps >= 2 parallel grid steps for v7x's 2 TCs)
    out_bf16 = transformer_encoder_layer(query, key_t, value, mask, params,
                                         num_heads=H,
                                         compute_dtype=jnp.bfloat16)
    out_bf16 = jax.block_until_ready(out_bf16)
    err = float(jnp.max(jnp.abs(out_bf16 - ref)))
    assert err < 0.2, err

    print("KERNEL_OK")
</pallas_src>

<mosaic_0001>
module attributes {stable_mosaic.version = 11 : i64} {
  func.func @encoder_layer_kernel(%arg0: i32, %arg1: memref<1x8x32xf32, #tpu.memory_space<vmem>>, %arg2: memref<1x8x32xf32, #tpu.memory_space<vmem>>, %arg3: memref<1x8x32xf32, #tpu.memory_space<vmem>>, %arg4: memref<1x8x8xi8, #tpu.memory_space<vmem>>, %arg5: memref<32x32xf32, #tpu.memory_space<vmem>>, %arg6: memref<32x32xf32, #tpu.memory_space<vmem>>, %arg7: memref<32x32xf32, #tpu.memory_space<vmem>>, %arg8: memref<32x32xf32, #tpu.memory_space<vmem>>, %arg9: memref<32x64xf32, #tpu.memory_space<vmem>>, %arg10: memref<64x32xf32, #tpu.memory_space<vmem>>, %arg11: memref<1x64xf32, #tpu.memory_space<vmem>>, %arg12: memref<9x32xf32, #tpu.memory_space<vmem>>, %arg13: memref<1x8x32xf32, #tpu.memory_space<vmem>>) attributes {dimension_semantics = [#tpu.dimension_semantics<parallel>], iteration_bounds = array<i64: 2>, scalar_prefetch = 0 : i64, scratch_operands = 0 : i64, tpu.core_type = #tpu.core_type<tc>, window_params = [{transform_indices = @transform_0, window_bounds = array<i64: 1, 8, 32>}, {transform_indices = @transform_1, window_bounds = array<i64: 1, 8, 32>}, {transform_indices = @transform_2, window_bounds = array<i64: 1, 8, 32>}, {transform_indices = @transform_3, window_bounds = array<i64: 1, 8, 8>}, {pipeline_mode = #tpu.pipeline_mode<synchronous>, transform_indices = @transform_4, window_bounds = array<i64: 32, 32>}, {pipeline_mode = #tpu.pipeline_mode<synchronous>, transform_indices = @transform_5, window_bounds = array<i64: 32, 32>}, {pipeline_mode = #tpu.pipeline_mode<synchronous>, transform_indices = @transform_6, window_bounds = array<i64: 32, 32>}, {pipeline_mode = #tpu.pipeline_mode<synchronous>, transform_indices = @transform_7, window_bounds = array<i64: 32, 32>}, {pipeline_mode = #tpu.pipeline_mode<synchronous>, transform_indices = @transform_8, window_bounds = array<i64: 32, 64>}, {pipeline_mode = #tpu.pipeline_mode<synchronous>, transform_indices = @transform_9, window_bounds = array<i64: 64, 32>}, {pipeline_mode = #tpu.pipeline_mode<synchronous>, transform_indices = @transform_10, window_bounds = array<i64: 1, 64>}, {pipeline_mode = #tpu.pipeline_mode<synchronous>, transform_indices = @transform_11, window_bounds = array<i64: 9, 32>}, {transform_indices = @transform_12, window_bounds = array<i64: 1, 8, 32>}]} {
    %c0 = arith.constant 0 : index
    %c0_0 = arith.constant 0 : index
    %0 = vector.load %arg12[%c0, %c0_0] : memref<9x32xf32, #tpu.memory_space<vmem>>, vector<9x32xf32>
    %1 = vector.extract_strided_slice %0 {offsets = [0, 0], sizes = [1, 32], strides = [1, 1]} : vector<9x32xf32> to vector<1x32xf32>
    %2 = vector.extract_strided_slice %0 {offsets = [1, 0], sizes = [1, 32], strides = [1, 1]} : vector<9x32xf32> to vector<1x32xf32>
    %3 = vector.extract_strided_slice %0 {offsets = [2, 0], sizes = [1, 32], strides = [1, 1]} : vector<9x32xf32> to vector<1x32xf32>
    %4 = vector.extract_strided_slice %0 {offsets = [3, 0], sizes = [1, 32], strides = [1, 1]} : vector<9x32xf32> to vector<1x32xf32>
    %5 = vector.extract_strided_slice %0 {offsets = [4, 0], sizes = [1, 32], strides = [1, 1]} : vector<9x32xf32> to vector<1x32xf32>
    %6 = vector.extract_strided_slice %0 {offsets = [5, 0], sizes = [1, 32], strides = [1, 1]} : vector<9x32xf32> to vector<1x32xf32>
    %7 = vector.extract_strided_slice %0 {offsets = [6, 0], sizes = [1, 32], strides = [1, 1]} : vector<9x32xf32> to vector<1x32xf32>
    %8 = vector.extract_strided_slice %0 {offsets = [7, 0], sizes = [1, 32], strides = [1, 1]} : vector<9x32xf32> to vector<1x32xf32>
    %9 = vector.extract_strided_slice %0 {offsets = [8, 0], sizes = [1, 32], strides = [1, 1]} : vector<9x32xf32> to vector<1x32xf32>
    %c0_1 = arith.constant 0 : index
    %c0_2 = arith.constant 0 : index
    %c0_3 = arith.constant 0 : index
    %10 = vector.load %arg1[%c0_1, %c0_2, %c0_3] : memref<1x8x32xf32, #tpu.memory_space<vmem>>, vector<1x8x32xf32>
    %11 = vector.shape_cast %10 : vector<1x8x32xf32> to vector<8x32xf32>
    %c0_4 = arith.constant 0 : index
    %c0_5 = arith.constant 0 : index
    %c0_6 = arith.constant 0 : index
    %12 = vector.load %arg2[%c0_4, %c0_5, %c0_6] : memref<1x8x32xf32, #tpu.memory_space<vmem>>, vector<1x8x32xf32>
    %13 = vector.shape_cast %12 : vector<1x8x32xf32> to vector<8x32xf32>
    %c0_7 = arith.constant 0 : index
    %c0_8 = arith.constant 0 : index
    %c0_9 = arith.constant 0 : index
    %14 = vector.load %arg3[%c0_7, %c0_8, %c0_9] : memref<1x8x32xf32, #tpu.memory_space<vmem>>, vector<1x8x32xf32>
    %15 = vector.shape_cast %14 : vector<1x8x32xf32> to vector<8x32xf32>
    %c0_10 = arith.constant 0 : index
    %c0_11 = arith.constant 0 : index
    %16 = vector.load %arg5[%c0_10, %c0_11] : memref<32x32xf32, #tpu.memory_space<vmem>>, vector<32x32xf32>
    %cst = arith.constant dense<0.000000e+00> : vector<8x32xf32>
    %17 = tpu.matmul %11, %16, %cst {dimension_numbers = #tpu.dot_dimension_numbers<[1], [0], [0], [1], [0, 0, 1, 1], [], []>} : vector<8x32xf32>, vector<32x32xf32>, vector<8x32xf32> -> vector<8x32xf32>
    %18 = vector.broadcast %1 : vector<1x32xf32> to vector<8x32xf32>
    %19 = arith.addf %17, %18 : vector<8x32xf32>
    %c0_12 = arith.constant 0 : index
    %c0_13 = arith.constant 0 : index
    %20 = vector.load %arg6[%c0_12, %c0_13] : memref<32x32xf32, #tpu.memory_space<vmem>>, vector<32x32xf32>
    %cst_14 = arith.constant dense<0.000000e+00> : vector<8x32xf32>
    %21 = tpu.matmul %13, %20, %cst_14 {dimension_numbers = #tpu.dot_dimension_numbers<[1], [0], [0], [1], [0, 0, 1, 1], [], []>} : vector<8x32xf32>, vector<32x32xf32>, vector<8x32xf32> -> vector<8x32xf32>
    %22 = vector.broadcast %2 : vector<1x32xf32> to vector<8x32xf32>
    %23 = arith.addf %21, %22 : vector<8x32xf32>
    %c0_15 = arith.constant 0 : index
    %c0_16 = arith.constant 0 : index
    %24 = vector.load %arg7[%c0_15, %c0_16] : memref<32x32xf32, #tpu.memory_space<vmem>>, vector<32x32xf32>
    %cst_17 = arith.constant dense<0.000000e+00> : vector<8x32xf32>
    %25 = tpu.matmul %15, %24, %cst_17 {dimension_numbers = #tpu.dot_dimension_numbers<[1], [0], [0], [1], [0, 0, 1, 1], [], []>} : vector<8x32xf32>, vector<32x32xf32>, vector<8x32xf32> -> vector<8x32xf32>
    %26 = vector.broadcast %3 : vector<1x32xf32> to vector<8x32xf32>
    %27 = arith.addf %25, %26 : vector<8x32xf32>
    %28 = vector.shape_cast %19 : vector<8x32xf32> to vector<1x8x32xf32>
    %29 = vector.extract_strided_slice %28 {offsets = [0, 0, 0], sizes = [1, 8, 8], strides = [1, 1, 1]} : vector<1x8x32xf32> to vector<1x8x8xf32>
    %30 = vector.extract_strided_slice %28 {offsets = [0, 0, 8], sizes = [1, 8, 8], strides = [1, 1, 1]} : vector<1x8x32xf32> to vector<1x8x8xf32>
    %31 = vector.extract_strided_slice %28 {offsets = [0, 0, 16], sizes = [1, 8, 8], strides = [1, 1, 1]} : vector<1x8x32xf32> to vector<1x8x8xf32>
    %32 = vector.extract_strided_slice %28 {offsets = [0, 0, 24], sizes = [1, 8, 8], strides = [1, 1, 1]} : vector<1x8x32xf32> to vector<1x8x8xf32>
    %33 = tpu.concatenate %29, %30, %31, %32 in 0 : vector<1x8x8xf32>, vector<1x8x8xf32>, vector<1x8x8xf32>, vector<1x8x8xf32> -> vector<4x8x8xf32>
    %34 = vector.shape_cast %23 : vector<8x32xf32> to vector<1x8x32xf32>
    %35 = vector.extract_strided_slice %34 {offsets = [0, 0, 0], sizes = [1, 8, 8], strides = [1, 1, 1]} : vector<1x8x32xf32> to vector<1x8x8xf32>
    %36 = vector.extract_strided_slice %34 {offsets = [0, 0, 8], sizes = [1, 8, 8], strides = [1, 1, 1]} : vector<1x8x32xf32> to vector<1x8x8xf32>
    %37 = vector.extract_strided_slice %34 {offsets = [0, 0, 16], sizes = [1, 8, 8], strides = [1, 1, 1]} : vector<1x8x32xf32> to vector<1x8x8xf32>
    %38 = vector.extract_strided_slice %34 {offsets = [0, 0, 24], sizes = [1, 8, 8], strides = [1, 1, 1]} : vector<1x8x32xf32> to vector<1x8x8xf32>
    %39 = tpu.concatenate %35, %36, %37, %38 in 0 : vector<1x8x8xf32>, vector<1x8x8xf32>, vector<1x8x8xf32>, vector<1x8x8xf32> -> vector<4x8x8xf32>
    %40 = vector.shape_cast %27 : vector<8x32xf32> to vector<1x8x32xf32>
    %41 = vector.extract_strided_slice %40 {offsets = [0, 0, 0], sizes = [1, 8, 8], strides = [1, 1, 1]} : vector<1x8x32xf32> to vector<1x8x8xf32>
    %42 = vector.extract_strided_slice %40 {offsets = [0, 0, 8], sizes = [1, 8, 8], strides = [1, 1, 1]} : vector<1x8x32xf32> to vector<1x8x8xf32>
    %43 = vector.extract_strided_slice %40 {offsets = [0, 0, 16], sizes = [1, 8, 8], strides = [1, 1, 1]} : vector<1x8x32xf32> to vector<1x8x8xf32>
    %44 = vector.extract_strided_slice %40 {offsets = [0, 0, 24], sizes = [1, 8, 8], strides = [1, 1, 1]} : vector<1x8x32xf32> to vector<1x8x8xf32>
    %45 = tpu.concatenate %41, %42, %43, %44 in 0 : vector<1x8x8xf32>, vector<1x8x8xf32>, vector<1x8x8xf32>, vector<1x8x8xf32> -> vector<4x8x8xf32>
    "tpu.trace_start"() <{level = 10 : i32, message = "gqd,gkd->gqk"}> : () -> ()
    %cst_18 = arith.constant dense<0.000000e+00> : vector<4x8x8xf32>
    %46 = tpu.matmul %33, %39, %cst_18 {dimension_numbers = #tpu.dot_dimension_numbers<[2], [2], [1], [1], [0, 0, 0, 1, 1, 1], [0], [0]>} : vector<4x8x8xf32>, vector<4x8x8xf32>, vector<4x8x8xf32> -> vector<4x8x8xf32>
    "tpu.trace_stop"() : () -> ()
    %c0_19 = arith.constant 0 : index
    %c0_20 = arith.constant 0 : index
    %c0_21 = arith.constant 0 : index
    %47 = vector.load %arg4[%c0_19, %c0_20, %c0_21] : memref<1x8x8xi8, #tpu.memory_space<vmem>>, vector<1x8x8xi8>
    %c0_i8 = arith.constant 0 : i8
    %48 = vector.broadcast %c0_i8 : i8 to vector<1x8x8xi8>
    %49 = arith.cmpi ne, %47, %48 : vector<1x8x8xi8>
    %50 = vector.shape_cast %49 : vector<1x8x8xi1> to vector<1x1x8x8xi1>
    %51 = vector.shape_cast %50 : vector<1x1x8x8xi1> to vector<1x1x8x8xi1>
    %52 = vector.broadcast %51 : vector<1x1x8x8xi1> to vector<4x1x8x8xi1>
    %53 = vector.shape_cast %52 : vector<4x1x8x8xi1> to vector<4x8x8xi1>
    %cst_22 = arith.constant 3.275200e+04 : f32
    %54 = vector.broadcast %cst_22 : f32 to vector<4x8x8xf32>
    %55 = arith.select %53, %54, %46 : vector<4x8x8xi1>, vector<4x8x8xf32>
    %cst_23 = arith.constant dense<0xFF800000> : vector<4x8xf32>
    %56 = vector.multi_reduction <maximumf>, %55, %cst_23 [2] : vector<4x8x8xf32> to vector<4x8xf32>
    %57 = vector.shape_cast %56 : vector<4x8xf32> to vector<4x8x1xf32>
    %58 = vector.broadcast %57 : vector<4x8x1xf32> to vector<4x8x8xf32>
    %59 = arith.subf %55, %58 : vector<4x8x8xf32>
    %60 = math.exp %59 : vector<4x8x8xf32>
    %cst_24 = arith.constant dense<0.000000e+00> : vector<4x8xf32>
    %61 = vector.multi_reduction <add>, %60, %cst_24 [2] : vector<4x8x8xf32> to vector<4x8xf32>
    %62 = vector.shape_cast %61 : vector<4x8xf32> to vector<4x8x1xf32>
    %63 = tpu.reciprocal %62 : vector<4x8x1xf32> -> vector<4x8x1xf32>
    %64 = vector.broadcast %63 : vector<4x8x1xf32> to vector<4x8x8xf32>
    %65 = arith.mulf %60, %64 : vector<4x8x8xf32>
    "tpu.trace_start"() <{level = 10 : i32, message = "gqk,gkd->gqd"}> : () -> ()
    %cst_25 = arith.constant dense<0.000000e+00> : vector<4x8x8xf32>
    %66 = tpu.matmul %65, %45, %cst_25 {dimension_numbers = #tpu.dot_dimension_numbers<[2], [1], [1], [2], [0, 0, 0, 1, 1, 2], [0], [0]>} : vector<4x8x8xf32>, vector<4x8x8xf32>, vector<4x8x8xf32> -> vector<4x8x8xf32>
    "tpu.trace_stop"() : () -> ()
    %67 = vector.extract_strided_slice %66 {offsets = [0, 0, 0], sizes = [1, 8, 8], strides = [1, 1, 1]} : vector<4x8x8xf32> to vector<1x8x8xf32>
    %68 = vector.shape_cast %67 : vector<1x8x8xf32> to vector<8x8xf32>
    %69 = vector.extract_strided_slice %66 {offsets = [1, 0, 0], sizes = [1, 8, 8], strides = [1, 1, 1]} : vector<4x8x8xf32> to vector<1x8x8xf32>
    %70 = vector.shape_cast %69 : vector<1x8x8xf32> to vector<8x8xf32>
    %71 = vector.extract_strided_slice %66 {offsets = [2, 0, 0], sizes = [1, 8, 8], strides = [1, 1, 1]} : vector<4x8x8xf32> to vector<1x8x8xf32>
    %72 = vector.shape_cast %71 : vector<1x8x8xf32> to vector<8x8xf32>
    %73 = vector.extract_strided_slice %66 {offsets = [3, 0, 0], sizes = [1, 8, 8], strides = [1, 1, 1]} : vector<4x8x8xf32> to vector<1x8x8xf32>
    %74 = vector.shape_cast %73 : vector<1x8x8xf32> to vector<8x8xf32>
    %75 = tpu.concatenate %68, %70, %72, %74 in 1 : vector<8x8xf32>, vector<8x8xf32>, vector<8x8xf32>, vector<8x8xf32> -> vector<8x32xf32>
    %c0_26 = arith.constant 0 : index
    %c0_27 = arith.constant 0 : index
    %76 = vector.load %arg8[%c0_26, %c0_27] : memref<32x32xf32, #tpu.memory_space<vmem>>, vector<32x32xf32>
    %cst_28 = arith.constant dense<0.000000e+00> : vector<8x32xf32>
    %77 = tpu.matmul %75, %76, %cst_28 {dimension_numbers = #tpu.dot_dimension_numbers<[1], [0], [0], [1], [0, 0, 1, 1], [], []>} : vector<8x32xf32>, vector<32x32xf32>, vector<8x32xf32> -> vector<8x32xf32>
    %78 = vector.broadcast %4 : vector<1x32xf32> to vector<8x32xf32>
    %79 = arith.addf %77, %78 : vector<8x32xf32>
    %80 = arith.addf %79, %11 : vector<8x32xf32>
    %cst_29 = arith.constant dense<0.000000e+00> : vector<8xf32>
    %81 = vector.multi_reduction <add>, %80, %cst_29 [1] : vector<8x32xf32> to vector<8xf32>
    %82 = vector.shape_cast %81 : vector<8xf32> to vector<8x1xf32>
    %cst_30 = arith.constant 3.200000e+01 : f32
    %83 = vector.broadcast %cst_30 : f32 to vector<8x1xf32>
    %84 = arith.divf %82, %83 : vector<8x1xf32>
    %85 = vector.broadcast %84 : vector<8x1xf32> to vector<8x32xf32>
    %86 = arith.subf %80, %85 : vector<8x32xf32>
    %87 = arith.mulf %86, %86 : vector<8x32xf32>
    %cst_31 = arith.constant dense<0.000000e+00> : vector<8xf32>
    %88 = vector.multi_reduction <add>, %87, %cst_31 [1] : vector<8x32xf32> to vector<8xf32>
    %89 = vector.shape_cast %88 : vector<8xf32> to vector<8x1xf32>
    %cst_32 = arith.constant 0.0322580636 : f32
    %90 = vector.broadcast %cst_32 : f32 to vector<8x1xf32>
    %91 = arith.mulf %89, %90 : vector<8x1xf32>
    %92 = math.sqrt %91 : vector<8x1xf32>
    %cst_33 = arith.constant 9.99999997E-7 : f32
    %93 = vector.broadcast %cst_33 : f32 to vector<8x1xf32>
    %94 = arith.addf %92, %93 : vector<8x1xf32>
    %95 = tpu.reciprocal %94 : vector<8x1xf32> -> vector<8x1xf32>
    %96 = vector.broadcast %84 : vector<8x1xf32> to vector<8x32xf32>
    %97 = arith.subf %80, %96 : vector<8x32xf32>
    %98 = vector.broadcast %6 : vector<1x32xf32> to vector<8x32xf32>
    %99 = arith.mulf %98, %97 : vector<8x32xf32>
    %100 = vector.broadcast %95 : vector<8x1xf32> to vector<8x32xf32>
    %101 = arith.mulf %99, %100 : vector<8x32xf32>
    %102 = vector.broadcast %7 : vector<1x32xf32> to vector<8x32xf32>
    %103 = arith.addf %101, %102 : vector<8x32xf32>
    %c0_34 = arith.constant 0 : index
    %c0_35 = arith.constant 0 : index
    %104 = vector.load %arg9[%c0_34, %c0_35] : memref<32x64xf32, #tpu.memory_space<vmem>>, vector<32x64xf32>
    %cst_36 = arith.constant dense<0.000000e+00> : vector<8x64xf32>
    %105 = tpu.matmul %103, %104, %cst_36 {dimension_numbers = #tpu.dot_dimension_numbers<[1], [0], [0], [1], [0, 0, 1, 1], [], []>} : vector<8x32xf32>, vector<32x64xf32>, vector<8x64xf32> -> vector<8x64xf32>
    %c0_37 = arith.constant 0 : index
    %c0_38 = arith.constant 0 : index
    %106 = vector.load %arg11[%c0_37, %c0_38] : memref<1x64xf32, #tpu.memory_space<vmem>>, vector<1x64xf32>
    %107 = vector.broadcast %106 : vector<1x64xf32> to vector<8x64xf32>
    %108 = arith.addf %105, %107 : vector<8x64xf32>
    %cst_39 = arith.constant 5.000000e-01 : f32
    %109 = vector.broadcast %cst_39 : f32 to vector<8x64xf32>
    %110 = arith.mulf %109, %108 : vector<8x64xf32>
    %cst_40 = arith.constant 0.707106769 : f32
    %111 = vector.broadcast %cst_40 : f32 to vector<8x64xf32>
    %112 = arith.mulf %108, %111 : vector<8x64xf32>
    %113 = math.erf %112 : vector<8x64xf32>
    %cst_41 = arith.constant 1.000000e+00 : f32
    %114 = vector.broadcast %cst_41 : f32 to vector<8x64xf32>
    %115 = arith.addf %114, %113 : vector<8x64xf32>
    %116 = arith.mulf %110, %115 : vector<8x64xf32>
    %c0_42 = arith.constant 0 : index
    %c0_43 = arith.constant 0 : index
    %117 = vector.load %arg10[%c0_42, %c0_43] : memref<64x32xf32, #tpu.memory_space<vmem>>, vector<64x32xf32>
    %cst_44 = arith.constant dense<0.000000e+00> : vector<8x32xf32>
    %118 = tpu.matmul %116, %117, %cst_44 {dimension_numbers = #tpu.dot_dimension_numbers<[1], [0], [0], [1], [0, 0, 1, 1], [], []>} : vector<8x64xf32>, vector<64x32xf32>, vector<8x32xf32> -> vector<8x32xf32>
    %119 = vector.broadcast %5 : vector<1x32xf32> to vector<8x32xf32>
    %120 = arith.addf %118, %119 : vector<8x32xf32>
    %121 = arith.addf %120, %103 : vector<8x32xf32>
    %cst_45 = arith.constant dense<0.000000e+00> : vector<8xf32>
    %122 = vector.multi_reduction <add>, %121, %cst_45 [1] : vector<8x32xf32> to vector<8xf32>
    %123 = vector.shape_cast %122 : vector<8xf32> to vector<8x1xf32>
    %cst_46 = arith.constant 3.200000e+01 : f32
    %124 = vector.broadcast %cst_46 : f32 to vector<8x1xf32>
    %125 = arith.divf %123, %124 : vector<8x1xf32>
    %126 = vector.broadcast %125 : vector<8x1xf32> to vector<8x32xf32>
    %127 = arith.subf %121, %126 : vector<8x32xf32>
    %128 = arith.mulf %127, %127 : vector<8x32xf32>
    %cst_47 = arith.constant dense<0.000000e+00> : vector<8xf32>
    %129 = vector.multi_reduction <add>, %128, %cst_47 [1] : vector<8x32xf32> to vector<8xf32>
    %130 = vector.shape_cast %129 : vector<8xf32> to vector<8x1xf32>
    %cst_48 = arith.constant 0.0322580636 : f32
    %131 = vector.broadcast %cst_48 : f32 to vector<8x1xf32>
    %132 = arith.mulf %130, %131 : vector<8x1xf32>
    %133 = math.sqrt %132 : vector<8x1xf32>
    %cst_49 = arith.constant 9.99999997E-7 : f32
    %134 = vector.broadcast %cst_49 : f32 to vector<8x1xf32>
    %135 = arith.addf %133, %134 : vector<8x1xf32>
    %136 = tpu.reciprocal %135 : vector<8x1xf32> -> vector<8x1xf32>
    %137 = vector.broadcast %125 : vector<8x1xf32> to vector<8x32xf32>
    %138 = arith.subf %121, %137 : vector<8x32xf32>
    %139 = vector.broadcast %8 : vector<1x32xf32> to vector<8x32xf32>
    %140 = arith.mulf %139, %138 : vector<8x32xf32>
    %141 = vector.broadcast %136 : vector<8x1xf32> to vector<8x32xf32>
    %142 = arith.mulf %140, %141 : vector<8x32xf32>
    %143 = vector.broadcast %9 : vector<1x32xf32> to vector<8x32xf32>
    %144 = arith.addf %142, %143 : vector<8x32xf32>
    %145 = vector.shape_cast %144 : vector<8x32xf32> to vector<1x8x32xf32>
    %c0_50 = arith.constant 0 : index
    %c0_51 = arith.constant 0 : index
    %c0_52 = arith.constant 0 : index
    %146 = vector.load %arg13[%c0_50, %c0_51, %c0_52] : memref<1x8x32xf32, #tpu.memory_space<vmem>>, vector<1x8x32xf32>
    tpu.vector_store %arg13[%c0_50, %c0_51, %c0_52], %145 {strides = array<i32>} : memref<1x8x32xf32, #tpu.memory_space<vmem>>, vector<1x8x32xf32>,
    return
  }
  func.func @transform_0(%arg0: i32) -> (i32, i32, i32) {
    %c0_i32 = arith.constant 0 : i32
    %c0_i32_0 = arith.constant 0 : i32
    %c0_i32_1 = arith.constant 0 : i32
    return %arg0, %c0_i32, %c0_i32_0 : i32, i32, i32
  }
  func.func @transform_1(%arg0: i32) -> (i32, i32, i32) {
    %c0_i32 = arith.constant 0 : i32
    %c0_i32_0 = arith.constant 0 : i32
    %c0_i32_1 = arith.constant 0 : i32
    return %arg0, %c0_i32, %c0_i32_0 : i32, i32, i32
  }
  func.func @transform_2(%arg0: i32) -> (i32, i32, i32) {
    %c0_i32 = arith.constant 0 : i32
    %c0_i32_0 = arith.constant 0 : i32
    %c0_i32_1 = arith.constant 0 : i32
    return %arg0, %c0_i32, %c0_i32_0 : i32, i32, i32
  }
  func.func @transform_3(%arg0: i32) -> (i32, i32, i32) {
    %c0_i32 = arith.constant 0 : i32
    %c0_i32_0 = arith.constant 0 : i32
    %c0_i32_1 = arith.constant 0 : i32
    return %arg0, %c0_i32, %c0_i32_0 : i32, i32, i32
  }
  func.func @transform_4(%arg0: i32) -> (i32, i32) {
    %c0_i32 = arith.constant 0 : i32
    %c0_i32_0 = arith.constant 0 : i32
    %c0_i32_1 = arith.constant 0 : i32
    return %c0_i32, %c0_i32_0 : i32, i32
  }
  func.func @transform_5(%arg0: i32) -> (i32, i32) {
    %c0_i32 = arith.constant 0 : i32
    %c0_i32_0 = arith.constant 0 : i32
    %c0_i32_1 = arith.constant 0 : i32
    return %c0_i32, %c0_i32_0 : i32, i32
  }
  func.func @transform_6(%arg0: i32) -> (i32, i32) {
    %c0_i32 = arith.constant 0 : i32
    %c0_i32_0 = arith.constant 0 : i32
    %c0_i32_1 = arith.constant 0 : i32
    return %c0_i32, %c0_i32_0 : i32, i32
  }
  func.func @transform_7(%arg0: i32) -> (i32, i32) {
    %c0_i32 = arith.constant 0 : i32
    %c0_i32_0 = arith.constant 0 : i32
    %c0_i32_1 = arith.constant 0 : i32
    return %c0_i32, %c0_i32_0 : i32, i32
  }
  func.func @transform_8(%arg0: i32) -> (i32, i32) {
    %c0_i32 = arith.constant 0 : i32
    %c0_i32_0 = arith.constant 0 : i32
    %c0_i32_1 = arith.constant 0 : i32
    return %c0_i32, %c0_i32_0 : i32, i32
  }
  func.func @transform_9(%arg0: i32) -> (i32, i32) {
    %c0_i32 = arith.constant 0 : i32
    %c0_i32_0 = arith.constant 0 : i32
    %c0_i32_1 = arith.constant 0 : i32
    return %c0_i32, %c0_i32_0 : i32, i32
  }
  func.func @transform_10(%arg0: i32) -> (i32, i32) {
    %c0_i32 = arith.constant 0 : i32
    %c0_i32_0 = arith.constant 0 : i32
    %c0_i32_1 = arith.constant 0 : i32
    return %c0_i32, %c0_i32_0 : i32, i32
  }
  func.func @transform_11(%arg0: i32) -> (i32, i32) {
    %c0_i32 = arith.constant 0 : i32
    %c0_i32_0 = arith.constant 0 : i32
    %c0_i32_1 = arith.constant 0 : i32
    return %c0_i32, %c0_i32_0 : i32, i32
  }
  func.func @transform_12(%arg0: i32) -> (i32, i32, i32) {
    %c0_i32 = arith.constant 0 : i32
    %c0_i32_0 = arith.constant 0 : i32
    %c0_i32_1 = arith.constant 0 : i32
    return %arg0, %c0_i32, %c0_i32_0 : i32, i32, i32
  }
}

module attributes {stable_mosaic.version = 11 : i64} {
  func.func @encoder_layer_kernel(%arg0: i32, %arg1: memref<1x8x32xf32, #tpu.memory_space<vmem>>, %arg2: memref<1x8x32xf32, #tpu.memory_space<vmem>>, %arg3: memref<1x8x32xf32, #tpu.memory_space<vmem>>, %arg4: memref<1x8x8xi8, #tpu.memory_space<vmem>>, %arg5: memref<32x32xf32, #tpu.memory_space<vmem>>, %arg6: memref<32x32xf32, #tpu.memory_space<vmem>>, %arg7: memref<32x32xf32, #tpu.memory_space<vmem>>, %arg8: memref<32x32xf32, #tpu.memory_space<vmem>>, %arg9: memref<32x64xf32, #tpu.memory_space<vmem>>, %arg10: memref<64x32xf32, #tpu.memory_space<vmem>>, %arg11: memref<1x64xf32, #tpu.memory_space<vmem>>, %arg12: memref<9x32xf32, #tpu.memory_space<vmem>>, %arg13: memref<1x8x32xf32, #tpu.memory_space<vmem>>) attributes {dimension_semantics = [#tpu.dimension_semantics<parallel>], iteration_bounds = array<i64: 2>, scalar_prefetch = 0 : i64, scratch_operands = 0 : i64, tpu.core_type = #tpu.core_type<tc>, window_params = [{transform_indices = @transform_0, window_bounds = array<i64: 1, 8, 32>}, {transform_indices = @transform_1, window_bounds = array<i64: 1, 8, 32>}, {transform_indices = @transform_2, window_bounds = array<i64: 1, 8, 32>}, {transform_indices = @transform_3, window_bounds = array<i64: 1, 8, 8>}, {pipeline_mode = #tpu.pipeline_mode<synchronous>, transform_indices = @transform_4, window_bounds = array<i64: 32, 32>}, {pipeline_mode = #tpu.pipeline_mode<synchronous>, transform_indices = @transform_5, window_bounds = array<i64: 32, 32>}, {pipeline_mode = #tpu.pipeline_mode<synchronous>, transform_indices = @transform_6, window_bounds = array<i64: 32, 32>}, {pipeline_mode = #tpu.pipeline_mode<synchronous>, transform_indices = @transform_7, window_bounds = array<i64: 32, 32>}, {pipeline_mode = #tpu.pipeline_mode<synchronous>, transform_indices = @transform_8, window_bounds = array<i64: 32, 64>}, {pipeline_mode = #tpu.pipeline_mode<synchronous>, transform_indices = @transform_9, window_bounds = array<i64: 64, 32>}, {pipeline_mode = #tpu.pipeline_mode<synchronous>, transform_indices = @transform_10, window_bounds = array<i64: 1, 64>}, {pipeline_mode = #tpu.pipeline_mode<synchronous>, transform_indices = @transform_11, window_bounds = array<i64: 9, 32>}, {transform_indices = @transform_12, window_bounds = array<i64: 1, 8, 32>}]} {
    %c0 = arith.constant 0 : index
    %c0_0 = arith.constant 0 : index
    %0 = vector.load %arg12[%c0, %c0_0] : memref<9x32xf32, #tpu.memory_space<vmem>>, vector<9x32xf32>
    %1 = vector.extract_strided_slice %0 {offsets = [0, 0], sizes = [1, 32], strides = [1, 1]} : vector<9x32xf32> to vector<1x32xf32>
    %2 = vector.extract_strided_slice %0 {offsets = [1, 0], sizes = [1, 32], strides = [1, 1]} : vector<9x32xf32> to vector<1x32xf32>
    %3 = vector.extract_strided_slice %0 {offsets = [2, 0], sizes = [1, 32], strides = [1, 1]} : vector<9x32xf32> to vector<1x32xf32>
    %4 = vector.extract_strided_slice %0 {offsets = [3, 0], sizes = [1, 32], strides = [1, 1]} : vector<9x32xf32> to vector<1x32xf32>
    %5 = vector.extract_strided_slice %0 {offsets = [4, 0], sizes = [1, 32], strides = [1, 1]} : vector<9x32xf32> to vector<1x32xf32>
    %6 = vector.extract_strided_slice %0 {offsets = [5, 0], sizes = [1, 32], strides = [1, 1]} : vector<9x32xf32> to vector<1x32xf32>
    %7 = vector.extract_strided_slice %0 {offsets = [6, 0], sizes = [1, 32], strides = [1, 1]} : vector<9x32xf32> to vector<1x32xf32>
    %8 = vector.extract_strided_slice %0 {offsets = [7, 0], sizes = [1, 32], strides = [1, 1]} : vector<9x32xf32> to vector<1x32xf32>
    %9 = vector.extract_strided_slice %0 {offsets = [8, 0], sizes = [1, 32], strides = [1, 1]} : vector<9x32xf32> to vector<1x32xf32>
    %c0_1 = arith.constant 0 : index
    %c0_2 = arith.constant 0 : index
    %c0_3 = arith.constant 0 : index
    %10 = vector.load %arg1[%c0_1, %c0_2, %c0_3] : memref<1x8x32xf32, #tpu.memory_space<vmem>>, vector<1x8x32xf32>
    %11 = vector.shape_cast %10 : vector<1x8x32xf32> to vector<8x32xf32>
    %c0_4 = arith.constant 0 : index
    %c0_5 = arith.constant 0 : index
    %c0_6 = arith.constant 0 : index
    %12 = vector.load %arg2[%c0_4, %c0_5, %c0_6] : memref<1x8x32xf32, #tpu.memory_space<vmem>>, vector<1x8x32xf32>
    %13 = vector.shape_cast %12 : vector<1x8x32xf32> to vector<8x32xf32>
    %c0_7 = arith.constant 0 : index
    %c0_8 = arith.constant 0 : index
    %c0_9 = arith.constant 0 : index
    %14 = vector.load %arg3[%c0_7, %c0_8, %c0_9] : memref<1x8x32xf32, #tpu.memory_space<vmem>>, vector<1x8x32xf32>
    %15 = vector.shape_cast %14 : vector<1x8x32xf32> to vector<8x32xf32>
    %c0_10 = arith.constant 0 : index
    %c0_11 = arith.constant 0 : index
    %16 = vector.load %arg5[%c0_10, %c0_11] : memref<32x32xf32, #tpu.memory_space<vmem>>, vector<32x32xf32>
    %cst = arith.constant dense<0.000000e+00> : vector<8x32xf32>
    %17 = tpu.matmul %11, %16, %cst {dimension_numbers = #tpu.dot_dimension_numbers<[1], [0], [0], [1], [0, 0, 1, 1], [], []>} : vector<8x32xf32>, vector<32x32xf32>, vector<8x32xf32> -> vector<8x32xf32>
    %18 = vector.broadcast %1 : vector<1x32xf32> to vector<8x32xf32>
    %19 = arith.addf %17, %18 : vector<8x32xf32>
    %c0_12 = arith.constant 0 : index
    %c0_13 = arith.constant 0 : index
    %20 = vector.load %arg6[%c0_12, %c0_13] : memref<32x32xf32, #tpu.memory_space<vmem>>, vector<32x32xf32>
    %cst_14 = arith.constant dense<0.000000e+00> : vector<8x32xf32>
    %21 = tpu.matmul %13, %20, %cst_14 {dimension_numbers = #tpu.dot_dimension_numbers<[1], [0], [0], [1], [0, 0, 1, 1], [], []>} : vector<8x32xf32>, vector<32x32xf32>, vector<8x32xf32> -> vector<8x32xf32>
    %22 = vector.broadcast %2 : vector<1x32xf32> to vector<8x32xf32>
    %23 = arith.addf %21, %22 : vector<8x32xf32>
    %c0_15 = arith.constant 0 : index
    %c0_16 = arith.constant 0 : index
    %24 = vector.load %arg7[%c0_15, %c0_16] : memref<32x32xf32, #tpu.memory_space<vmem>>, vector<32x32xf32>
    %cst_17 = arith.constant dense<0.000000e+00> : vector<8x32xf32>
    %25 = tpu.matmul %15, %24, %cst_17 {dimension_numbers = #tpu.dot_dimension_numbers<[1], [0], [0], [1], [0, 0, 1, 1], [], []>} : vector<8x32xf32>, vector<32x32xf32>, vector<8x32xf32> -> vector<8x32xf32>
    %26 = vector.broadcast %3 : vector<1x32xf32> to vector<8x32xf32>
    %27 = arith.addf %25, %26 : vector<8x32xf32>
    %28 = vector.shape_cast %19 : vector<8x32xf32> to vector<1x8x32xf32>
    %29 = vector.extract_strided_slice %28 {offsets = [0, 0, 0], sizes = [1, 8, 8], strides = [1, 1, 1]} : vector<1x8x32xf32> to vector<1x8x8xf32>
    %30 = vector.extract_strided_slice %28 {offsets = [0, 0, 8], sizes = [1, 8, 8], strides = [1, 1, 1]} : vector<1x8x32xf32> to vector<1x8x8xf32>
    %31 = vector.extract_strided_slice %28 {offsets = [0, 0, 16], sizes = [1, 8, 8], strides = [1, 1, 1]} : vector<1x8x32xf32> to vector<1x8x8xf32>
    %32 = vector.extract_strided_slice %28 {offsets = [0, 0, 24], sizes = [1, 8, 8], strides = [1, 1, 1]} : vector<1x8x32xf32> to vector<1x8x8xf32>
    %33 = tpu.concatenate %29, %30, %31, %32 in 0 : vector<1x8x8xf32>, vector<1x8x8xf32>, vector<1x8x8xf32>, vector<1x8x8xf32> -> vector<4x8x8xf32>
    %34 = vector.shape_cast %23 : vector<8x32xf32> to vector<1x8x32xf32>
    %35 = vector.extract_strided_slice %34 {offsets = [0, 0, 0], sizes = [1, 8, 8], strides = [1, 1, 1]} : vector<1x8x32xf32> to vector<1x8x8xf32>
    %36 = vector.extract_strided_slice %34 {offsets = [0, 0, 8], sizes = [1, 8, 8], strides = [1, 1, 1]} : vector<1x8x32xf32> to vector<1x8x8xf32>
    %37 = vector.extract_strided_slice %34 {offsets = [0, 0, 16], sizes = [1, 8, 8], strides = [1, 1, 1]} : vector<1x8x32xf32> to vector<1x8x8xf32>
    %38 = vector.extract_strided_slice %34 {offsets = [0, 0, 24], sizes = [1, 8, 8], strides = [1, 1, 1]} : vector<1x8x32xf32> to vector<1x8x8xf32>
    %39 = tpu.concatenate %35, %36, %37, %38 in 0 : vector<1x8x8xf32>, vector<1x8x8xf32>, vector<1x8x8xf32>, vector<1x8x8xf32> -> vector<4x8x8xf32>
    %40 = vector.shape_cast %27 : vector<8x32xf32> to vector<1x8x32xf32>
    %41 = vector.extract_strided_slice %40 {offsets = [0, 0, 0], sizes = [1, 8, 8], strides = [1, 1, 1]} : vector<1x8x32xf32> to vector<1x8x8xf32>
    %42 = vector.extract_strided_slice %40 {offsets = [0, 0, 8], sizes = [1, 8, 8], strides = [1, 1, 1]} : vector<1x8x32xf32> to vector<1x8x8xf32>
    %43 = vector.extract_strided_slice %40 {offsets = [0, 0, 16], sizes = [1, 8, 8], strides = [1, 1, 1]} : vector<1x8x32xf32> to vector<1x8x8xf32>
    %44 = vector.extract_strided_slice %40 {offsets = [0, 0, 24], sizes = [1, 8, 8], strides = [1, 1, 1]} : vector<1x8x32xf32> to vector<1x8x8xf32>
    %45 = tpu.concatenate %41, %42, %43, %44 in 0 : vector<1x8x8xf32>, vector<1x8x8xf32>, vector<1x8x8xf32>, vector<1x8x8xf32> -> vector<4x8x8xf32>
    "tpu.trace_start"() <{level = 10 : i32, message = "gqd,gkd->gqk"}> : () -> ()
    %cst_18 = arith.constant dense<0.000000e+00> : vector<4x8x8xf32>
    %46 = tpu.matmul %33, %39, %cst_18 {dimension_numbers = #tpu.dot_dimension_numbers<[2], [2], [1], [1], [0, 0, 0, 1, 1, 1], [0], [0]>} : vector<4x8x8xf32>, vector<4x8x8xf32>, vector<4x8x8xf32> -> vector<4x8x8xf32>
    "tpu.trace_stop"() : () -> ()
    %c0_19 = arith.constant 0 : index
    %c0_20 = arith.constant 0 : index
    %c0_21 = arith.constant 0 : index
    %47 = vector.load %arg4[%c0_19, %c0_20, %c0_21] : memref<1x8x8xi8, #tpu.memory_space<vmem>>, vector<1x8x8xi8>
    %c0_i8 = arith.constant 0 : i8
    %48 = vector.broadcast %c0_i8 : i8 to vector<1x8x8xi8>
    %49 = arith.cmpi ne, %47, %48 : vector<1x8x8xi8>
    %50 = vector.shape_cast %49 : vector<1x8x8xi1> to vector<1x1x8x8xi1>
    %51 = vector.shape_cast %50 : vector<1x1x8x8xi1> to vector<1x1x8x8xi1>
    %52 = vector.broadcast %51 : vector<1x1x8x8xi1> to vector<4x1x8x8xi1>
    %53 = vector.shape_cast %52 : vector<4x1x8x8xi1> to vector<4x8x8xi1>
    %cst_22 = arith.constant 3.275200e+04 : f32
    %54 = vector.broadcast %cst_22 : f32 to vector<4x8x8xf32>
    %55 = arith.select %53, %54, %46 : vector<4x8x8xi1>, vector<4x8x8xf32>
    %cst_23 = arith.constant dense<0xFF800000> : vector<4x8xf32>
    %56 = vector.multi_reduction <maximumf>, %55, %cst_23 [2] : vector<4x8x8xf32> to vector<4x8xf32>
    %57 = vector.shape_cast %56 : vector<4x8xf32> to vector<4x8x1xf32>
    %58 = vector.broadcast %57 : vector<4x8x1xf32> to vector<4x8x8xf32>
    %59 = arith.subf %55, %58 : vector<4x8x8xf32>
    %60 = math.exp %59 : vector<4x8x8xf32>
    %cst_24 = arith.constant dense<0.000000e+00> : vector<4x8xf32>
    %61 = vector.multi_reduction <add>, %60, %cst_24 [2] : vector<4x8x8xf32> to vector<4x8xf32>
    %62 = vector.shape_cast %61 : vector<4x8xf32> to vector<4x8x1xf32>
    %63 = tpu.reciprocal %62 : vector<4x8x1xf32> -> vector<4x8x1xf32>
    %64 = vector.broadcast %63 : vector<4x8x1xf32> to vector<4x8x8xf32>
    %65 = arith.mulf %60, %64 : vector<4x8x8xf32>
    "tpu.trace_start"() <{level = 10 : i32, message = "gqk,gkd->gqd"}> : () -> ()
    %cst_25 = arith.constant dense<0.000000e+00> : vector<4x8x8xf32>
    %66 = tpu.matmul %65, %45, %cst_25 {dimension_numbers = #tpu.dot_dimension_numbers<[2], [1], [1], [2], [0, 0, 0, 1, 1, 2], [0], [0]>} : vector<4x8x8xf32>, vector<4x8x8xf32>, vector<4x8x8xf32> -> vector<4x8x8xf32>
    "tpu.trace_stop"() : () -> ()
    %67 = vector.extract_strided_slice %66 {offsets = [0, 0, 0], sizes = [1, 8, 8], strides = [1, 1, 1]} : vector<4x8x8xf32> to vector<1x8x8xf32>
    %68 = vector.shape_cast %67 : vector<1x8x8xf32> to vector<8x8xf32>
    %69 = vector.extract_strided_slice %66 {offsets = [1, 0, 0], sizes = [1, 8, 8], strides = [1, 1, 1]} : vector<4x8x8xf32> to vector<1x8x8xf32>
    %70 = vector.shape_cast %69 : vector<1x8x8xf32> to vector<8x8xf32>
    %71 = vector.extract_strided_slice %66 {offsets = [2, 0, 0], sizes = [1, 8, 8], strides = [1, 1, 1]} : vector<4x8x8xf32> to vector<1x8x8xf32>
    %72 = vector.shape_cast %71 : vector<1x8x8xf32> to vector<8x8xf32>
    %73 = vector.extract_strided_slice %66 {offsets = [3, 0, 0], sizes = [1, 8, 8], strides = [1, 1, 1]} : vector<4x8x8xf32> to vector<1x8x8xf32>
    %74 = vector.shape_cast %73 : vector<1x8x8xf32> to vector<8x8xf32>
    %75 = tpu.concatenate %68, %70, %72, %74 in 1 : vector<8x8xf32>, vector<8x8xf32>, vector<8x8xf32>, vector<8x8xf32> -> vector<8x32xf32>
    %c0_26 = arith.constant 0 : index
    %c0_27 = arith.constant 0 : index
    %76 = vector.load %arg8[%c0_26, %c0_27] : memref<32x32xf32, #tpu.memory_space<vmem>>, vector<32x32xf32>
    %cst_28 = arith.constant dense<0.000000e+00> : vector<8x32xf32>
    %77 = tpu.matmul %75, %76, %cst_28 {dimension_numbers = #tpu.dot_dimension_numbers<[1], [0], [0], [1], [0, 0, 1, 1], [], []>} : vector<8x32xf32>, vector<32x32xf32>, vector<8x32xf32> -> vector<8x32xf32>
    %78 = vector.broadcast %4 : vector<1x32xf32> to vector<8x32xf32>
    %79 = arith.addf %77, %78 : vector<8x32xf32>
    %80 = arith.addf %79, %11 : vector<8x32xf32>
    %cst_29 = arith.constant dense<0.000000e+00> : vector<8xf32>
    %81 = vector.multi_reduction <add>, %80, %cst_29 [1] : vector<8x32xf32> to vector<8xf32>
    %82 = vector.shape_cast %81 : vector<8xf32> to vector<8x1xf32>
    %cst_30 = arith.constant 3.200000e+01 : f32
    %83 = vector.broadcast %cst_30 : f32 to vector<8x1xf32>
    %84 = arith.divf %82, %83 : vector<8x1xf32>
    %85 = vector.broadcast %84 : vector<8x1xf32> to vector<8x32xf32>
    %86 = arith.subf %80, %85 : vector<8x32xf32>
    %87 = arith.mulf %86, %86 : vector<8x32xf32>
    %cst_31 = arith.constant dense<0.000000e+00> : vector<8xf32>
    %88 = vector.multi_reduction <add>, %87, %cst_31 [1] : vector<8x32xf32> to vector<8xf32>
    %89 = vector.shape_cast %88 : vector<8xf32> to vector<8x1xf32>
    %cst_32 = arith.constant 0.0322580636 : f32
    %90 = vector.broadcast %cst_32 : f32 to vector<8x1xf32>
    %91 = arith.mulf %89, %90 : vector<8x1xf32>
    %92 = math.sqrt %91 : vector<8x1xf32>
    %cst_33 = arith.constant 9.99999997E-7 : f32
    %93 = vector.broadcast %cst_33 : f32 to vector<8x1xf32>
    %94 = arith.addf %92, %93 : vector<8x1xf32>
    %95 = tpu.reciprocal %94 : vector<8x1xf32> -> vector<8x1xf32>
    %96 = vector.broadcast %84 : vector<8x1xf32> to vector<8x32xf32>
    %97 = arith.subf %80, %96 : vector<8x32xf32>
    %98 = vector.broadcast %6 : vector<1x32xf32> to vector<8x32xf32>
    %99 = arith.mulf %98, %97 : vector<8x32xf32>
    %100 = vector.broadcast %95 : vector<8x1xf32> to vector<8x32xf32>
    %101 = arith.mulf %99, %100 : vector<8x32xf32>
    %102 = vector.broadcast %7 : vector<1x32xf32> to vector<8x32xf32>
    %103 = arith.addf %101, %102 : vector<8x32xf32>
    %c0_34 = arith.constant 0 : index
    %c0_35 = arith.constant 0 : index
    %104 = vector.load %arg9[%c0_34, %c0_35] : memref<32x64xf32, #tpu.memory_space<vmem>>, vector<32x64xf32>
    %cst_36 = arith.constant dense<0.000000e+00> : vector<8x64xf32>
    %105 = tpu.matmul %103, %104, %cst_36 {dimension_numbers = #tpu.dot_dimension_numbers<[1], [0], [0], [1], [0, 0, 1, 1], [], []>} : vector<8x32xf32>, vector<32x64xf32>, vector<8x64xf32> -> vector<8x64xf32>
    %c0_37 = arith.constant 0 : index
    %c0_38 = arith.constant 0 : index
    %106 = vector.load %arg11[%c0_37, %c0_38] : memref<1x64xf32, #tpu.memory_space<vmem>>, vector<1x64xf32>
    %107 = vector.broadcast %106 : vector<1x64xf32> to vector<8x64xf32>
    %108 = arith.addf %105, %107 : vector<8x64xf32>
    %cst_39 = arith.constant 5.000000e-01 : f32
    %109 = vector.broadcast %cst_39 : f32 to vector<8x64xf32>
    %110 = arith.mulf %109, %108 : vector<8x64xf32>
    %cst_40 = arith.constant 0.707106769 : f32
    %111 = vector.broadcast %cst_40 : f32 to vector<8x64xf32>
    %112 = arith.mulf %108, %111 : vector<8x64xf32>
    %113 = math.erf %112 : vector<8x64xf32>
    %cst_41 = arith.constant 1.000000e+00 : f32
    %114 = vector.broadcast %cst_41 : f32 to vector<8x64xf32>
    %115 = arith.addf %114, %113 : vector<8x64xf32>
    %116 = arith.mulf %110, %115 : vector<8x64xf32>
    %c0_42 = arith.constant 0 : index
    %c0_43 = arith.constant 0 : index
    %117 = vector.load %arg10[%c0_42, %c0_43] : memref<64x32xf32, #tpu.memory_space<vmem>>, vector<64x32xf32>
    %cst_44 = arith.constant dense<0.000000e+00> : vector<8x32xf32>
    %118 = tpu.matmul %116, %117, %cst_44 {dimension_numbers = #tpu.dot_dimension_numbers<[1], [0], [0], [1], [0, 0, 1, 1], [], []>} : vector<8x64xf32>, vector<64x32xf32>, vector<8x32xf32> -> vector<8x32xf32>
    %119 = vector.broadcast %5 : vector<1x32xf32> to vector<8x32xf32>
    %120 = arith.addf %118, %119 : vector<8x32xf32>
    %121 = arith.addf %120, %103 : vector<8x32xf32>
    %cst_45 = arith.constant dense<0.000000e+00> : vector<8xf32>
    %122 = vector.multi_reduction <add>, %121, %cst_45 [1] : vector<8x32xf32> to vector<8xf32>
    %123 = vector.shape_cast %122 : vector<8xf32> to vector<8x1xf32>
    %cst_46 = arith.constant 3.200000e+01 : f32
    %124 = vector.broadcast %cst_46 : f32 to vector<8x1xf32>
    %125 = arith.divf %123, %124 : vector<8x1xf32>
    %126 = vector.broadcast %125 : vector<8x1xf32> to vector<8x32xf32>
    %127 = arith.subf %121, %126 : vector<8x32xf32>
    %128 = arith.mulf %127, %127 : vector<8x32xf32>
    %cst_47 = arith.constant dense<0.000000e+00> : vector<8xf32>
    %129 = vector.multi_reduction <add>, %128, %cst_47 [1] : vector<8x32xf32> to vector<8xf32>
    %130 = vector.shape_cast %129 : vector<8xf32> to vector<8x1xf32>
    %cst_48 = arith.constant 0.0322580636 : f32
    %131 = vector.broadcast %cst_48 : f32 to vector<8x1xf32>
    %132 = arith.mulf %130, %131 : vector<8x1xf32>
    %133 = math.sqrt %132 : vector<8x1xf32>
    %cst_49 = arith.constant 9.99999997E-7 : f32
    %134 = vector.broadcast %cst_49 : f32 to vector<8x1xf32>
    %135 = arith.addf %133, %134 : vector<8x1xf32>
    %136 = tpu.reciprocal %135 : vector<8x1xf32> -> vector<8x1xf32>
    %137 = vector.broadcast %125 : vector<8x1xf32> to vector<8x32xf32>
    %138 = arith.subf %121, %137 : vector<8x32xf32>
    %139 = vector.broadcast %8 : vector<1x32xf32> to vector<8x32xf32>
    %140 = arith.mulf %139, %138 : vector<8x32xf32>
    %141 = vector.broadcast %136 : vector<8x1xf32> to vector<8x32xf32>
    %142 = arith.mulf %140, %141 : vector<8x32xf32>
    %143 = vector.broadcast %9 : vector<1x32xf32> to vector<8x32xf32>
    %144 = arith.addf %142, %143 : vector<8x32xf32>
    %145 = vector.shape_cast %144 : vector<8x32xf32> to vector<1x8x32xf32>
    %c0_50 = arith.constant 0 : index
    %c0_51 = arith.constant 0 : index
    %c0_52 = arith.constant 0 : index
    %146 = vector.load %arg13[%c0_50, %c0_51, %c0_52] : memref<1x8x32xf32, #tpu.memory_space<vmem>>, vector<1x8x32xf32>
    tpu.vector_store %arg13[%c0_50, %c0_51, %c0_52], %145 {strides = array<i32>} : memref<1x8x32xf32, #tpu.memory_space<vmem>>, vector<1x8x32xf32>,
    return
  }
  func.func @transform_0(%arg0: i32) -> (i32, i32, i32) {
    %c0_i32 = arith.constant 0 : i32
    %c0_i32_0 = arith.constant 0 : i32
    %c0_i32_1 = arith.constant 0 : i32
    return %arg0, %c0_i32, %c0_i32_0 : i32, i32, i32
  }
  func.func @transform_1(%arg0: i32) -> (i32, i32, i32) {
    %c0_i32 = arith.constant 0 : i32
    %c0_i32_0 = arith.constant 0 : i32
    %c0_i32_1 = arith.constant 0 : i32
    return %arg0, %c0_i32, %c0_i32_0 : i32, i32, i32
  }
  func.func @transform_2(%arg0: i32) -> (i32, i32, i32) {
    %c0_i32 = arith.constant 0 : i32
    %c0_i32_0 = arith.constant 0 : i32
    %c0_i32_1 = arith.constant 0 : i32
    return %arg0, %c0_i32, %c0_i32_0 : i32, i32, i32
  }
  func.func @transform_3(%arg0: i32) -> (i32, i32, i32) {
    %c0_i32 = arith.constant 0 : i32
    %c0_i32_0 = arith.constant 0 : i32
    %c0_i32_1 = arith.constant 0 : i32
    return %arg0, %c0_i32, %c0_i32_0 : i32, i32, i32
  }
  func.func @transform_4(%arg0: i32) -> (i32, i32) {
    %c0_i32 = arith.constant 0 : i32
    %c0_i32_0 = arith.constant 0 : i32
    %c0_i32_1 = arith.constant 0 : i32
    return %c0_i32, %c0_i32_0 : i32, i32
  }
  func.func @transform_5(%arg0: i32) -> (i32, i32) {
    %c0_i32 = arith.constant 0 : i32
    %c0_i32_0 = arith.constant 0 : i32
    %c0_i32_1 = arith.constant 0 : i32
    return %c0_i32, %c0_i32_0 : i32, i32
  }
  func.func @transform_6(%arg0: i32) -> (i32, i32) {
    %c0_i32 = arith.constant 0 : i32
    %c0_i32_0 = arith.constant 0 : i32
    %c0_i32_1 = arith.constant 0 : i32
    return %c0_i32, %c0_i32_0 : i32, i32
  }
  func.func @transform_7(%arg0: i32) -> (i32, i32) {
    %c0_i32 = arith.constant 0 : i32
    %c0_i32_0 = arith.constant 0 : i32
    %c0_i32_1 = arith.constant 0 : i32
    return %c0_i32, %c0_i32_0 : i32, i32
  }
  func.func @transform_8(%arg0: i32) -> (i32, i32) {
    %c0_i32 = arith.constant 0 : i32
    %c0_i32_0 = arith.constant 0 : i32
    %c0_i32_1 = arith.constant 0 : i32
    return %c0_i32, %c0_i32_0 : i32, i32
  }
  func.func @transform_9(%arg0: i32) -> (i32, i32) {
    %c0_i32 = arith.constant 0 : i32
    %c0_i32_0 = arith.constant 0 : i32
    %c0_i32_1 = arith.constant 0 : i32
    return %c0_i32, %c0_i32_0 : i32, i32
  }
  func.func @transform_10(%arg0: i32) -> (i32, i32) {
    %c0_i32 = arith.constant 0 : i32
    %c0_i32_0 = arith.constant 0 : i32
    %c0_i32_1 = arith.constant 0 : i32
    return %c0_i32, %c0_i32_0 : i32, i32
  }
  func.func @transform_11(%arg0: i32) -> (i32, i32) {
    %c0_i32 = arith.constant 0 : i32
    %c0_i32_0 = arith.constant 0 : i32
    %c0_i32_1 = arith.constant 0 : i32
    return %c0_i32, %c0_i32_0 : i32, i32
  }
  func.func @transform_12(%arg0: i32) -> (i32, i32, i32) {
    %c0_i32 = arith.constant 0 : i32
    %c0_i32_0 = arith.constant 0 : i32
    %c0_i32_1 = arith.constant 0 : i32
    return %arg0, %c0_i32, %c0_i32_0 : i32, i32, i32
  }
}

</mosaic_0001>

<bundles_post_ra>
// kernel: run.1
= control target key start
LH: loop header
LB: loop body
LE: loop exit
PB: predicated region body
PF: predicated region fallthrough
CT: control target
= control target key end

     0   :  { %s2825_s0 = inlined_call_operand.vmem [shape: f32[2,8,32], index: 0, kind: input, shape index: {}]   ;;  %s2826_s1 = inlined_call_operand.hbm [shape: f32[2,8,32], index: 1, kind: input, shape index: {}]   ;;  %s2827_s2 = inlined_call_operand.hbm [shape: f32[2,8,32], index: 2, kind: input, shape index: {}]   ;;  %s2828_s3 = inlined_call_operand.vmem [shape: s8[2,8,8], index: 3, kind: input, shape index: {}]   ;;  %s2829_s4 = inlined_call_operand.vmem [shape: f32[32,32], index: 4, kind: input, shape index: {}]   ;;  %s2830_s5 = inlined_call_operand.vmem [shape: f32[32,32], index: 5, kind: input, shape index: {}]   ;;  %s2831_s6 = inlined_call_operand.vmem [shape: f32[32,32], index: 6, kind: input, shape index: {}]   ;;  %s2832_s7 = inlined_call_operand.vmem [shape: f32[32,32], index: 7, kind: input, shape index: {}]   ;;  %s2833_s8 = inlined_call_operand.vmem [shape: f32[32,64], index: 8, kind: input, shape index: {}]   ;;  %s2834_s9 = inlined_call_operand.vmem [shape: f32[64,32], index: 9, kind: input, shape index: {}]   ;;  %s2835_s10 = inlined_call_operand.vmem [shape: f32[1,64], index: 10, kind: input, shape index: {}]   ;;  %s2836_s11 = inlined_call_operand.vmem [shape: f32[9,32], index: 11, kind: input, shape index: {}]   ;;  %s2837_s12 = inlined_call_operand.hbm [shape: f32[2,8,32], index: 12, kind: output, shape index: {}]  }
   0x1   :  { %2847 = sst [smem:[#allocation16_spill]] %s2826_s1 }
   0x2   :  { %17 = vsyncpa [#allocation3], 0 }
   0x3   :  { %19 = vsyncpa [#allocation3 + $0x1], 0 }
   0x4   :  { %20 = vsyncpa [#allocation6], 0 }
   0x5   :  { %22 = vsyncpa [#allocation6 + $0x1], 0 }
   0x6   :  { %23 = vsyncpa [#allocation4], 0 }
   0x7   :  { %25 = vsyncpa [#allocation4 + $0x1], 0  ;;  %s2377_s21 = smov 0   ;;  %s2379_s22 = smov 0  }
   0x8   :  { %s2381_s23 = smov 0   ;;  %s2383_s24 = smov 0  }
   0x9 LB: > { %2848 = sst [smem:[#allocation11_spill]] %s2286_s21  ;;  %s2398_s25 = sadd.s32 4294967295, %s2298_s24   ;;  %s2298_s24 = sphi %s2383_s24, %s2873_s24   ;;  %s2294_s23 = sphi %s2381_s23, %s2875_s23   ;;  %s2290_s22 = sphi %s2379_s22, %s2877_s22   ;;  %s2286_s21 = sphi %s2377_s21, %s2876_s21  }
   0xa   : > { %2849 = sst [smem:[#allocation12_spill]] %s2294_s23  ;;  %s1887_s26 = sadd.s32 4294967294, %s2298_s24  }
   0xb   : > { %s2402_s27 = sadd.s32 1, %s2298_s24   ;;  %s64_s28 = sadd.s32 1, %s2294_s23 }
   0xc   : > { %2850 = sst [smem:[#allocation13_spill]] %s2402_s27  ;;  %s61_s29 = ssub.s32 %s2298_s24, %s2402_s27 }
   0xd   : > { %p71_p0 = scmp.ne.s32.totalorder %s2294_s23, %s2290_s22  ;;  %p62_p1 = scmp.eq.s32.totalorder %s61_s29, 0 }
   0xe   : > { %p72_p2 = scmp.eq.s32.totalorder %s2298_s24, 0  ;;  %p77_p3 = scmp.ne.s32.totalorder %s2290_s22, %s2286_s21 }
   0xf   : > { %p78_p4 = scmp.eq.s32.totalorder %s2398_s25, 0  ;;  %p321_p7 = scmp.eq.s32.totalorder %s2398_s25, 1 }
  0x10   : > { %s2414_s30 = scalar_select %p62_p1, %s2294_s23, %s64_s28  }
  0x11   : > { %p2416_p5 = por %p72_p2, %p71_p0  ;;  %p2420_p6 = por %p78_p4, %p77_p3 }
  0x12   : > { %2851 = sst [smem:[#allocation14_spill]] %s2414_s30  ;;  %p327_p8 = scmp.eq.s32.totalorder %s1887_s26, 1 }
  0x13   : > { %s2853_s14 = scalar_select %p2420_p6, 1, 0 }
  0x14   : > { %p2105_p10 = scmp.lt.s32.totalorder %s2298_s24, 2  ;;  %p2427_p11 = por %p321_p7, %p71_p0 }
  0x15   : > { %p2431_p12 = por %p327_p8, %p77_p3  ;;  %s2436_s17 = sand.u32 1, %s2294_s23  }
  0x16   : > { %s2854_s15 = scalar_select %p2427_p11, 1, 0 }
  0x17   : > { %s2855_s16 = scalar_select %p2431_p12, 1, 0 }
  0x18   : > { %s2840_s18 = sshll.u32 %s2298_s24, 7  ;;  %s2839_s19 = sshll.u32 %s2436_s17, 3 }
  0x19   : > { %2856 = sst [smem:[#allocation15_spill]] %s2855_s16  ;;  %s382_s29 = scalar_lea.vmem [#allocation2], %s2839_s19 }
  0x1a   : > { %s2857_s1 = sld [smem:[#allocation16_spill]]  ;;  %s389_s30 = sshll.u32 %s382_s29, 4  ;;  %s2455_s30 = int_to_ptr.vmem [resolvable:$true] %s389_s30 }
  0x1b   : > { %p2451_p13 = pnand %p2105_p10, %p2416_p5  ;;  %s379_s20 = scalar_lea.sflag [#allocation3], %s2436_s17 }
  0x1d   : > { %p2176_p3 = pneg %p2451_p13 }
  0x20   : > { %s2445_s28 = scalar_lea.hbm %s2857_s1, %s2840_s18  ;;  %s2179_s19 = scalar_lea.hbm %s2857_s1, 256 }
  0x21   : > { %s2174_s26 = scalar_lea.hbm %s2445_s28, 128  ;;  %p2180_p5 = scmp.lt.s32.totalorder %s2445_s28, %s2857_s1 }
  0x22   : > { %p2175_p2 = scmp.ne.s32.totalorder %s2445_s28, %s2174_s26  ;;  %p2181_p8 = scmp.lt.s32.totalorder %s2179_s19, %s2174_s26 }
  0x24   : > { %p2177_p4 = pnand %p2176_p3, %p2175_p2  ;;  %p2182_p10 = por %p2181_p8, %p2180_p5 }
  0x26   : > { %p2178_p7 = pneg %p2177_p4 }
  0x28   : > { %p2183_p9 = pnand %p2182_p10, %p2178_p7 }
  0x2a   : > { %2186 = shalt.err (!%p2183_p9)
}
  0x2b   : > { %s2187_s16 = scalar_lea.vmem %s2455_s30, 128  ;;  %s2300_s13 = smov [#allocation2]  }
  0x2c   : > { %p2188_p0 = scmp.ne.s32.totalorder %s2455_s30, %s2187_s16  ;;  %s2192_s29 = sshll.u32 %s2300_s13, 4  ;;  %s2193_s29 = int_to_ptr.vmem [resolvable:$false] %s2192_s29 }
  0x2d   : > { %s2194_s21 = scalar_lea.vmem %s2193_s29, 256  ;;  %p2195_p1 = scmp.lt.s32.totalorder %s2455_s30, %s2193_s29 }
  0x2e   : > { %p2190_p2 = pnand %p2188_p0, %p2176_p3  ;;  %p2196_p12 = scmp.lt.s32.totalorder %s2194_s21, %s2187_s16 }
  0x30   : > { %p2191_p4 = pneg %p2190_p2  ;;  %p2197_p11 = por %p2196_p12, %p2195_p1 }
  0x32   : > { %p2198_p5 = pnand %p2197_p11, %p2191_p4 }
  0x34   : > { %2201 = shalt.err (!%p2198_p5)
}
  0x35   : > { %2097 = dma.hbm_to_vmem [thread:$0]  (!%p2451_p13), %s2445_s28, 128, %s2455_s30, %s379_s20  }
  0x36   : > { %p2859_p9 = scmp.lt.s32.totalorder %s2298_s24, 3  ;;  %p2860_p0 = scmp.ge.s32.totalorder %s2298_s24, 1 }
  0x37   : > { %s2862_s21 = sshll.u32 %s2298_s24, 7  ;;  %s2863_s26 = sshll.u32 %s2436_s17, 3 }
  0x38   : > { %p2488_p7 = pnand %p2860_p0, %p2859_p9  ;;  %s2497_s19 = scalar_lea.hbm %s2827_s2, %s2862_s21 }
  0x39   : > { %s400_s13 = scalar_lea.vmem [#allocation5], %s2863_s26  ;;  %s397_s30 = scalar_lea.sflag [#allocation6], %s2436_s17 }
  0x3a   : > { %s2861_s27 = scalar_select %p2488_p7, 1, 0 }
  0x3b   : > { %s407_s29 = sshll.u32 %s400_s13, 4  ;;  %s2202_s28 = scalar_lea.hbm %s2497_s19, 128  ;;  %s408_s29 = int_to_ptr.vmem [resolvable:$true] %s407_s29 }
  0x3c   : > { %p2203_p11 = scmp.ne.s32.totalorder %s2497_s19, %s2202_s28  ;;  %s2207_s16 = scalar_lea.hbm %s2827_s2, 256 }
  0x3d   : > { %p2208_p8 = scmp.lt.s32.totalorder %s2497_s19, %s2827_s2  ;;  %p2209_p10 = scmp.lt.s32.totalorder %s2207_s16, %s2202_s28 }
  0x3e   : > { %p2205_p12 = pnand %p2203_p11, %p2176_p3 }
  0x3f   : > { %p2210_p2 = por %p2209_p10, %p2208_p8 }
  0x40   : > { %p2206_p1 = pneg %p2205_p12 }
  0x42   : > { %p2211_p4 = pnand %p2210_p2, %p2206_p1 }
  0x44   : > { %2214 = shalt.err (!%p2211_p4)
}
  0x45   : > { %s2215_s26 = scalar_lea.vmem %s408_s29, 128  ;;  %s2301_s17 = smov [#allocation5]  }
  0x46   : > { %p2216_p5 = scmp.ne.s32.totalorder %s408_s29, %s2215_s26  ;;  %s2220_s13 = sshll.u32 %s2301_s17, 4  ;;  %s2221_s13 = int_to_ptr.vmem [resolvable:$false] %s2220_s13 }
  0x47   : > { %s2222_s1 = scalar_lea.vmem %s2221_s13, 256  ;;  %p2223_p11 = scmp.lt.s32.totalorder %s408_s29, %s2221_s13 }
  0x48   : > { %p2218_p9 = pnand %p2216_p5, %p2176_p3  ;;  %p2224_p12 = scmp.lt.s32.totalorder %s2222_s1, %s2215_s26 }
  0x4a   : > { %p2219_p0 = pneg %p2218_p9  ;;  %p2225_p6 = por %p2224_p12, %p2223_p11 }
  0x4c   : > { %p2226_p7 = pnand %p2225_p6, %p2219_p0 }
  0x4e   : > { %2229 = shalt.err (!%p2226_p7)
}
  0x4f   : > { %2100 = dma.hbm_to_vmem [thread:$0]  (!%p2451_p13), %s2497_s19, 128, %s408_s29, %s397_s30  }
  0x50   : > { %p2864_p1 = scmp.ne.s32.totalorder %s2861_s27, 0 }
  0x51   : > { %s2523_s28 = sand.u32 (!%p2864_p1), 1, %s2290_s22   ;;  %p2865_p6 = scmp.ne.s32.totalorder (!%p2864_p1), %s2853_s14, 0 }
  0x52   : > { %423 = sbr.rel (%p2864_p1) target bundleno = 2516 (0x9d4), region = 68  ;;  %s2526_s20 = sshll.u32 (!%p2864_p1), %s2523_s28, 3 }
  0x53   : > { %s426_s16 = scalar_lea.sflag (!%p2864_p1), [#allocation3], %s2523_s28  ;;  %s429_s21 = scalar_lea.vmem (!%p2864_p1), [#allocation2], %s2526_s20 }
  0x57   : > { %2273 = dma.done.wait (%p2865_p6), %s426_s16, 128  }
  0x58   : > { %2275 = vsyncadd (%p2865_p6), %s426_s16, 4294967168  ;;  %s435_s23 = scalar_lea.sflag [#allocation6], %s2523_s28  ;;  %s438_s27 = scalar_lea.vmem [#allocation5], %s2526_s20 }
  0x59   : > { %2277 = dma.done.wait (%p2865_p6), %s435_s23, 128  }
  0x5a   : > { %2279 = vsyncadd (%p2865_p6), %s435_s23, 4294967168  ;;  %p492_p13 = scmp.lt.s32.totalorder %s2398_s25, 1  ;;  %v2302_v0 = vmov 0.0   ;;  %vm2303_vm0 = vmmov 0   ;;  %v510_v1 = vld [vmem:[%s2829_s4 + $0x18] sm:$0xff]  ;;  %v509_v2 = vld [vmem:[%s2829_s4 + $0x10] sm:$0xff]  ;;  %v511_v15 = vlaneseq }
  0x5b   : > { %1974 = vmatprep.subr.mxu1 %v2302_v0  ;;  %1982 = vmatprep.mubr.msk.f32.mxu1 %vm2303_vm0, %v2302_v0  ;;  %v508_v3 = vld [vmem:[%s2829_s4 + $0x8] sm:$0xff]  ;;  %v507_v4 = vld [vmem:[%s2829_s4] sm:$0xff]  ;;  %vm515_vm1 = vcmask 261120   ;;  %v592_v6 = vld [vmem:[%s2830_s5 + $0x18] sm:$0xff]  ;;  %vm775_vm2 = vcmask 64512   ;;  %s2306_s29 = smov 104  }
  0x5c   : > { %s2545_s19 = scalar_select %p492_p13, %s2398_s25, 1  ;;  %1996 = vmatprep.subr.mxu0 %v2302_v0  ;;  %2004 = vmatprep.mubr.msk.f32.mxu0 %vm2303_vm0, %v2302_v0  ;;  %v591_v7 = vld [vmem:[%s2830_s5 + $0x10] sm:$0xff]  ;;  %v590_v8 = vld [vmem:[%s2830_s5 + $0x8] sm:$0xff]  ;;  %v589_v9 = vld [vmem:[%s2830_s5] sm:$0xff]  ;;  %v2616_v17 = vshrl.u32 %v511_v15, 7  ;;  %v2307_v41 = vmov 0  }
  0x5d   : > { %1975 = vmatpush3.msra.mxu1 %v510_v1  ;;  %v505_v10 = vld [vmem:[%s429_s21] sm:$0xff]  ;;  %v673_v11 = vld [vmem:[%s2831_s6 + $0x18] sm:$0xff]  ;;  %v672_v12 = vld [vmem:[%s2831_s6 + $0x10] sm:$0xff]  ;;  %s2310_s18 = smov 24   ;;  %vm1432_vm5 = vcmask 130048   ;;  %vm1434_vm6 = vcmask 195584  }
  0x5e   : > { %s1898_s14 = sshll.u32 %s2545_s19, 3  ;;  %1976 = vmatprep.subr.mxu1 %v2302_v0  ;;  %1997 = vmatpush3.msra.mxu0 %v673_v11  ;;  %v671_v13 = vld [vmem:[%s2831_s6 + $0x8] sm:$0xff]  ;;  %v670_v14 = vld [vmem:[%s2831_s6] sm:$0xff]  ;;  %v506_v16 = vld [vmem:[%s438_s27] sm:$0xff]  ;;  %v595_v19 = vsub.s32 1, %v2616_v17  ;;  %v513_v22 = vsub.s32 0, %v2616_v17 }
  0x5f   : > { %s495_s23 = scalar_lea.vmem %s2825_s0, %s1898_s14  ;;  %1977 = vmatpush3.msra.mxu1 %v509_v2  ;;  %1998 = vmatprep.subr.mxu0 %v2302_v0  ;;  %v2624_v21 = vld [vmem:[%s2836_s11] sm:$0xff]  ;;  %s2304_s27 = smov 112   ;;  %v676_v35 = vsub.s32 2, %v2616_v17  ;;  %vm1650_vm9 = vcmask 523264  }
  0x60   : > { %1978 = vmatprep.subr.mxu1 %v2302_v0  ;;  %v2568_v5 = vld [vmem:[%s495_s23] sm:$0xff]  ;;  %1999 = vmatpush3.msra.mxu0 %v672_v12  ;;  %v596_v23 = vrot.slane %v2624_v21, %v595_v19  ;;  %v514_v25 = vrot.slane %v2624_v21, %v513_v22  ;;  %s2305_s23 = smov 120   ;;  %s1899_s30 = sshll.u32 %s2545_s19, 1 }
  0x61   : > { %1979 = vmatpush3.msra.mxu1 %v508_v3  ;;  %2000 = vmatprep.subr.mxu0 %v2302_v0  ;;  %v677_v36 = vrot.slane %v2624_v21, %v676_v35  ;;  %s499_s21 = scalar_lea.vmem %s2828_s3, %s1899_s30  ;;  %s2309_s30 = smov 16  }
  0x62   : > { %1980 = vmatprep.subr.mxu1 %v2302_v0  ;;  %2001 = vmatpush3.msra.mxu0 %v671_v13  ;;  %v1072_v39 = vld [vmem:[%s499_s21] sm:$0x3]  ;;  %s1921_s19 = sshll.u32 %s2398_s25, 7  ;;  %s491_s14 = scalar_lea.vmem [#allocation7], %s2526_s20 }
  0x63   : > { %1981 = vmatpush3.msra.mxu1 %v507_v4  ;;  %2002 = vmatprep.subr.mxu0 %v2302_v0  ;;  %vm1073_vm3 = vnez %v1072_v39  ;;  %v1438_v39 = vld [vmem:[%s2832_s7 + $0x10] sm:$0xff]  ;;  %s1770_s17 = sshll.u32 %s491_s14, 4  ;;  %s1768_s16 = scalar_lea.hbm %s2837_s12, %s1921_s19  ;;  %s1771_s17 = int_to_ptr.vmem [resolvable:$true] %s1770_s17 }
  0x64   : > { %1983 = vmatmul.mubr.msk.f32.vlgmr.msra.gmra.mxu1 %vm515_vm1, %v2568_v5  ;;  %1985 = vmatprep.subr.mxu1 %v2302_v0  ;;  %v1074_v42 = vsel %vm1073_vm3, 16843009, %v2307_v41  ;;  %v1436_v41 = vld [vmem:[%s2832_s7] sm:$0xff]  ;;  %p2868_p7 = scmp.ne.s32.totalorder %s2854_s15, 0 }
  0x65   : > { %1986 = vmatpush3.msra.mxu1 %v592_v6  ;;  %1993 = vmatprep.mubr.msk.f32.mxu1 %vm2303_vm0, %v2302_v0  ;;  %v1075_v43 = vunpack.c.0.s8 %v1074_v42 }
  0x66   : > { %1987 = vmatprep.subr.mxu1 %v2302_v0  ;;  %2003 = vmatpush3.msra.mxu0 %v670_v14 }
  0x67   : > { %1988 = vmatpush3.msra.mxu1 %v591_v7  ;;  %2017 = vmatprep.subr.mxu0 %v2302_v0  ;;  %vm2662_vm4 = vcmp.ne.s32.totalorder %v1075_v43, 0 }
  0x68   : > { %1989 = vmatprep.subr.mxu1 %v2302_v0  ;;  %2005 = vmatmul.mubr.msk.f32.vlgmr.msra.gmra.mxu0 %vm515_vm1, %v506_v16 }
  0x69   : > { %1990 = vmatpush3.msra.mxu1 %v590_v8  ;;  %2019 = vmatprep.mubr.msk.f32.mxu0 %vm2303_vm0, %v2302_v0 }
  0x6a   : > { %1991 = vmatprep.subr.mxu1 %v2302_v0 }
  0x6b   : > { %1992 = vmatpush3.msra.mxu1 %v589_v9 }
  0x6c   : > { %1994 = vmatmul.mubr.msk.f32.vlgmr.msra.gmra.mxu1 %vm515_vm1, %v505_v10  ;;  %2007 = vmatprep.subr.mxu1 %v2302_v0 }
  0x6d   : > { %2009 = vmatprep.mubr.msk.f32.mxu1 %vm2303_vm0, %v2302_v0 }
 0x124   : > { %v585_v18 = vpop.f32.mrf.mxu1 }
 0x125   : > { %v586_v28 = vadd.f32 %v585_v18, %v514_v25 }
 0x126   : > { %v1984_v20 = vpop.f32.mrf.mxu1 }
 0x128   : > { %v747_v37 = vpop.f32.mrf.mxu0 }
 0x129   : > { %v748_v38 = vadd.f32 %v747_v37, %v677_v36 }
 0x12a   : > { %v2006_v40 = vpop.f32.mrf.mxu0 }
 0x12b   : > { %v1437_v40 = vld [vmem:[%s2832_s7 + $0x8] sm:$0xff] }
 0x12c   : > { %v666_v24 = vpop.f32.mrf.mxu1 }
 0x12d   : > { %v667_v26 = vadd.f32 %v666_v24, %v596_v23 }
 0x12e   : > { %v1995_v27 = vpop.f32.mrf.mxu1 }
 0x12f   : > { %761 = vrot.lane.b32.xlu1 %v667_v26, %s2304_s27  ;;  %759 = vrot.lane.b32.xlu0 %v667_v26, %s2305_s23 }
 0x130   : > { %2008 = vmatpush3.xpose.msk.msra.mxu1 %vm775_vm2, %v667_v26 }
 0x131   : > { %2012 = vmatprep.subr.mxu1 %v2302_v0 }
 0x133   : > { %2010 = vmatmul.mubr.msk.f32.vlgmr.msra.gmra.mxu1 %vm775_vm2, %v586_v28  ;;  %763 = vrot.lane.b32.xlu1 %v667_v26, %s2306_s29 }
 0x134   : > { %752 = vrot.lane.b32.xlu0 %v586_v28, %s2305_s23  ;;  %2014 = vmatprep.mubr.msk.f32.mxu1 %vm2303_vm0, %v2302_v0 }
 0x137   : > { %756 = vrot.lane.b32.xlu1 %v586_v28, %s2306_s29 }
 0x138   : > { %754 = vrot.lane.b32.xlu0 %v586_v28, %s2304_s27 }
 0x1a1   : > { %v762_v29 = vpop.permute.xlu1 %761  ;;  %v760_v30 = vpop.permute.xlu0 %759 }
 0x1a2   : > { %2013 = vmatpush3.xpose.msk.msra.mxu1 %vm775_vm2, %v760_v30  ;;  %2018 = vmatpush3.xpose.msk.msra.mxu0 %vm775_vm2, %v762_v29 }
 0x1a3   : > { %2022 = vmatprep.subr.mxu1 %v2302_v0  ;;  %2027 = vmatprep.subr.mxu0 %v2302_v0 }
 0x1a5   : > { %v764_v31 = vpop.permute.xlu1 %763 }
 0x1a6   : > { %v753_v32 = vpop.permute.xlu0 %752 }
 0x1a7   : > { %2015 = vmatmul.mubr.msk.f32.vlgmr.msra.gmra.mxu1 %vm775_vm2, %v753_v32 }
 0x1a8   : > { %2023 = vmatpush3.xpose.msk.msra.mxu1 %vm775_vm2, %v764_v31  ;;  %2024 = vmatprep.mubr.msk.f32.mxu1 %vm2303_vm0, %v2302_v0 }
 0x1a9   : > { %v757_v33 = vpop.permute.xlu1 %756  ;;  %2032 = vmatprep.subr.mxu1 %v2302_v0 }
 0x1aa   : > { %v755_v34 = vpop.permute.xlu0 %754 }
 0x1ab   : > { %2020 = vmatmul.mubr.msk.f32.vlgmr.msra.gmra.mxu0 %vm775_vm2, %v755_v34  ;;  %2025 = vmatmul.mubr.msk.f32.vlgmr.msra.gmra.mxu1 %vm775_vm2, %v757_v33 }
 0x1ac   : > { %2029 = vmatprep.mubr.msk.f32.mxu0 %vm2303_vm0, %v2302_v0  ;;  %2034 = vmatprep.mubr.msk.f32.mxu1 %vm2303_vm0, %v2302_v0 }
 0x1ad   : > { %2028 = vmatpush3.msra.mxu0 %v748_v38 }
 0x1ae   : > { %2037 = vmatprep.subr.mxu0 %v2302_v0 }
 0x1f3   : > { %v846_v45 = vpop.f32.mrf.mxu1 }
 0x1f4   : > { %v1079_v46 = vsel %vm2662_vm4, 32752.0, %v846_v45 }
 0x1f5   : > { %v2011_v47 = vpop.f32.mrf.mxu1  ;;  %v1083_v48 = vsel %vm775_vm2, %v1079_v46, -inf }
 0x1f6   : > { %1084 = vmax.xlane.f32.xlu0 %v1083_v48 }
 0x267   : > { %v920_v49 = vpop.f32.mrf.mxu1 }
 0x268   : > { %v1080_v50 = vsel %vm2662_vm4, 32752.0, %v920_v49 }
 0x269   : > { %v2016_v51 = vpop.f32.mrf.mxu1  ;;  %v1086_v52 = vsel %vm775_vm2, %v1080_v50, -inf }
 0x26a   : > { %1087 = vmax.xlane.f32.xlu1 %v1086_v52 }
 0x26b   : > { %v994_v53 = vpop.f32.mrf.mxu0  ;;  %v1068_v54 = vpop.f32.mrf.mxu1 }
 0x26c   : > { %v1081_v55 = vsel %vm2662_vm4, 32752.0, %v994_v53  ;;  %v1082_v59 = vsel %vm2662_vm4, 32752.0, %v1068_v54  ;;  %v1442_v54 = vsub.s32 3, %v2616_v17 }
 0x26d   : > { %v2021_v56 = vpop.f32.mrf.mxu0  ;;  %v2026_v57 = vpop.f32.mrf.mxu1  ;;  %v1089_v58 = vsel %vm775_vm2, %v1081_v55, -inf  ;;  %v1092_v60 = vsel %vm775_vm2, %v1082_v59, -inf }
 0x26e   : > { %1090 = vmax.xlane.f32.xlu0 %v1089_v58 }
 0x272   : > { %1093 = vmax.xlane.f32.xlu0 %v1092_v60 }
 0x27b   : > { %766 = vrot.lane.b32.xlu1 %v748_v38, %s2305_s23  ;;  %s2230_s23 = scalar_lea.vmem %s1771_s17, 128 }
 0x27c   : > { %p2231_p3 = scmp.ne.s32.totalorder %s1771_s17, %s2230_s23 }
 0x27e   : > { %p2232_p8 = pnand %p2231_p3, %p2868_p7 }
 0x27f   : > { %v1085_v61 = vpop.xlane.xlu0 %1084 }
 0x280   : > { %v1095_v62 = vsub.f32 %v1079_v46, %v1085_v61  ;;  %p2233_p10 = pneg %p2232_p8 }
 0x282   : > { %v1099_v63 = vmul.f32 1.442695, %v1095_v62 }
 0x284   : > { %2148 = vpow2.f32 %v1099_v63 }
 0x291   : > { %v2149_v1 = vpop.eup %2148 }
 0x292   : > { %v1107_v2 = vsel %vm775_vm2, %v2149_v1, 0.0 }
 0x29f   : > { %1108 = vadd.xlane.f32.xlu1 %v1107_v2 }
 0x2f3   : > { %v1088_v3 = vpop.xlane.xlu1 %1087 }
 0x2f4   : > { %v1096_v4 = vsub.f32 %v1080_v50, %v1088_v3  ;;  %v1552_v3 = vld [vmem:[%s2833_s8 + $0x18] sm:$0xff] }
 0x2f6   : > { %v1101_v6 = vmul.f32 1.442695, %v1096_v4  ;;  %v1551_v4 = vld [vmem:[%s2833_s8 + $0x10] sm:$0xff] }
 0x2f7   : > { %v1091_v7 = vpop.xlane.xlu0 %1090  ;;  %v767_v8 = vpop.permute.xlu1 %766 }
 0x2f8   : > { %2150 = vpow2.f32 %v1101_v6  ;;  %v1097_v9 = vsub.f32 %v1081_v55, %v1091_v7  ;;  %2033 = vmatpush3.msra.mxu1 %v767_v8  ;;  %v1443_v55 = vrot.slane %v2624_v21, %v1442_v54  ;;  %v1549_v6 = vld [vmem:[%s2833_s8] sm:$0xff] }
 0x2f9   : > { %2042 = vmatprep.subr.mxu1 %v2302_v0 }
 0x2fa   : > { %v1103_v10 = vmul.f32 1.442695, %v1097_v9 }
 0x2fb   : > { %v1094_v11 = vpop.xlane.xlu0 %1093 }
 0x2fc   : > { %2152 = vpow2.f32 %v1103_v10  ;;  %v1098_v12 = vsub.f32 %v1082_v59, %v1094_v11 }
 0x2fe   : > { %v1105_v13 = vmul.f32 1.442695, %v1098_v12 }
 0x300   : > { %2154 = vpow2.f32 %v1105_v13 }
 0x305   : > { %v2151_v14 = vpop.eup %2150 }
 0x306   : > { %v1110_v15 = vsel %vm775_vm2, %v2151_v14, 0.0 }
 0x307   : > { %1111 = vadd.xlane.f32.xlu0 %v1110_v15  ;;  %v1540_v15 = vsub.s32 5, %v2616_v17 }
 0x309   : > { %v2153_v16 = vpop.eup %2152 }
 0x30a   : > { %v1113_v18 = vsel %vm775_vm2, %v2153_v16, 0.0 }
 0x30b   : > { %1114 = vadd.xlane.f32.xlu1 %v1113_v18  ;;  %v1546_v18 = vsub.s32 6, %v2616_v17 }
 0x30d   : > { %v2155_v19 = vpop.eup %2154 }
 0x30e   : > { %v1116_v20 = vsel %vm775_vm2, %v2155_v19, 0.0 }
 0x30f   : > { %1117 = vadd.xlane.f32.xlu0 %v1116_v20  ;;  %v1547_v20 = vrot.slane %v2624_v21, %v1546_v18 }
 0x31c   : > { %772 = vrot.lane.b32.xlu1 %v748_v38, %s2306_s29  ;;  %s2308_s29 = smov 8  }
 0x325   : > { %769 = vrot.lane.b32.xlu0 %v748_v38, %s2304_s27  ;;  %v1439_v38 = vld [vmem:[%s2832_s7 + $0x18] sm:$0xff]  ;;  %s1757_s27 = scalar_lea.sflag [#allocation4], %s2523_s28 }
 0x328   : > { %v1109_v22 = vpop.xlane.xlu1 %1108 }
 0x329   : > { %2156 = vrcp.f32 %v1109_v22 }
 0x336   : > { %v2157_v23 = vpop.eup %2156 }
 0x337   : > { %v1123_v24 = vmul.f32 %v2157_v23, %v2149_v1 }
 0x339   : > { %2030 = vmatmul.mubr.msk.f32.vlgmr.msra.gmra.mxu0 %vm775_vm2, %v1123_v24 }
 0x33a   : > { %2039 = vmatprep.mubr.msk.f32.mxu0 %vm2303_vm0, %v2302_v0 }
 0x390   : > { %v1112_v25 = vpop.xlane.xlu0 %1111 }
 0x391   : > { %2158 = vrcp.f32 %v1112_v25  ;;  %v1645_v25 = vld [vmem:[%s2834_s9 + $0x38] sm:$0xff] }
 0x394   : > { %v1115_v26 = vpop.xlane.xlu1 %1114 }
 0x395   : > { %2160 = vrcp.f32 %v1115_v26  ;;  %v1644_v26 = vld [vmem:[%s2834_s9 + $0x30] sm:$0xff] }
 0x398   : > { %v1118_v27 = vpop.xlane.xlu0 %1117  ;;  %v773_v31 = vpop.permute.xlu1 %772 }
 0x399   : > { %2162 = vrcp.f32 %v1118_v27  ;;  %v1643_v27 = vld [vmem:[%s2834_s9 + $0x28] sm:$0xff] }
 0x39c   : > { %v770_v28 = vpop.permute.xlu0 %769 }
 0x39d   : > { %2038 = vmatpush3.msra.mxu0 %v770_v28  ;;  %v1642_v28 = vld [vmem:[%s2834_s9 + $0x20] sm:$0xff] }
 0x39e   : > { %v2159_v29 = vpop.eup %2158  ;;  %2047 = vmatprep.subr.mxu0 %v2302_v0 }
 0x39f   : > { %v1124_v30 = vmul.f32 %v2159_v29, %v2151_v14  ;;  %v1641_v29 = vld [vmem:[%s2834_s9 + $0x18] sm:$0xff] }
 0x3a1   : > { %2035 = vmatmul.mubr.msk.f32.vlgmr.msra.gmra.mxu1 %vm775_vm2, %v1124_v30  ;;  %v1640_v30 = vld [vmem:[%s2834_s9 + $0x10] sm:$0xff] }
 0x3a2   : > { %v2161_v32 = vpop.eup %2160  ;;  %2043 = vmatpush3.msra.mxu1 %v773_v31  ;;  %2044 = vmatprep.mubr.msk.f32.mxu1 %vm2303_vm0, %v2302_v0  ;;  %v1639_v31 = vld [vmem:[%s2834_s9 + $0x8] sm:$0xff] }
 0x3a3   : > { %v1125_v33 = vmul.f32 %v2161_v32, %v2153_v16  ;;  %2058 = vmatprep.subr.mxu1 %v2302_v0  ;;  %v1541_v16 = vrot.slane %v2624_v21, %v1540_v15  ;;  %v1638_v32 = vld [vmem:[%s2834_s9] sm:$0xff] }
 0x3a5   : > { %2040 = vmatmul.mubr.msk.f32.vlgmr.msra.gmra.mxu0 %vm775_vm2, %v1125_v33  ;;  %v1916_v33 = vld [vmem:[%s2835_s10] ss:$0 sm:$0xff] }
 0x3a6   : > { %v2163_v34 = vpop.eup %2162  ;;  %2055 = vmatprep.mubr.msk.f32.mxu0 %vm2303_vm0, %v2302_v0  ;;  %2048 = vmatpush3.msra.mxu0 %v1439_v38 }
 0x3a7   : > { %v1126_v35 = vmul.f32 %v2163_v34, %v2155_v19  ;;  %2049 = vmatprep.subr.mxu0 %v2302_v0 }
 0x3a8   : > { %2050 = vmatpush3.msra.mxu0 %v1438_v39 }
 0x3a9   : > { %2045 = vmatmul.mubr.msk.f32.vlgmr.msra.gmra.mxu1 %vm775_vm2, %v1126_v35  ;;  %2051 = vmatprep.subr.mxu0 %v2302_v0 }
 0x3aa   : > { %2066 = vmatprep.mubr.msk.f32.mxu1 %vm2303_vm0, %v2302_v0  ;;  %2052 = vmatpush3.msra.mxu0 %v1437_v40 }
 0x3ab   : > { %2053 = vmatprep.subr.mxu0 %v2302_v0  ;;  %2059 = vmatpush3.msra.mxu1 %v1552_v3 }
 0x3ac   : > { %2054 = vmatpush3.msra.mxu0 %v1436_v41  ;;  %2060 = vmatprep.subr.mxu1 %v2302_v0 }
 0x3ad   : > { %2069 = vmatprep.subr.mxu0 %v2302_v0  ;;  %2061 = vmatpush3.msra.mxu1 %v1551_v4 }
 0x3ae   : > { %2062 = vmatprep.subr.mxu1 %v2302_v0 }
 0x3f9   : > { %v1196_v36 = vpop.f32.mrf.mxu0 }
 0x3fb   : > { %v2031_v37 = vpop.f32.mrf.mxu0 }
 0x461   : > { %v1269_v42 = vpop.f32.mrf.mxu1 }
 0x462   : > { %1420 = vrot.lane.b32.xlu1 %v1269_v42, %s2308_s29  ;;  %v1648_v42 = vsub.s32 4, %v2616_v17  ;;  %s2311_s29 = smov [#allocation7]  }
 0x463   : > { %v2036_v43 = vpop.f32.mrf.mxu1 }
 0x465   : > { %v1342_v44 = vpop.f32.mrf.mxu0 }
 0x466   : > { %1424 = vrot.lane.b32.xlu0 %v1342_v44, %s2309_s30  ;;  %s2234_s30 = sshll.u32 %s2311_s29, 4  ;;  %s2235_s30 = int_to_ptr.vmem [resolvable:$false] %s2234_s30 }
 0x467   : > { %v2041_v45 = vpop.f32.mrf.mxu0  ;;  %s2236_s25 = scalar_lea.vmem %s2235_s30, 256  ;;  %p2237_p2 = scmp.lt.s32.totalorder %s1771_s17, %s2235_s30 }
 0x468   : > { %p2238_p4 = scmp.lt.s32.totalorder %s2236_s25, %s2230_s23 }
 0x469   : > { %v1415_v46 = vpop.f32.mrf.mxu1 }
 0x46a   : > { %1428 = vrot.lane.b32.xlu1 %v1415_v46, %s2310_s18  ;;  %p2239_p5 = por %p2238_p4, %p2237_p2 }
 0x46b   : > { %v2046_v47 = vpop.f32.mrf.mxu1 }
 0x46c   : > { %p2240_p9 = pnand %p2239_p5, %p2233_p10 }
 0x4d4   : > { %v1421_v48 = vpop.permute.xlu1 %1420 }
 0x4d5   : > { %v1431_v50 = vsel %vm775_vm2, %v1196_v36, %v1421_v48 }
 0x4d8   : > { %v1425_v49 = vpop.permute.xlu0 %1424 }
 0x4d9   : > { %v1433_v51 = vsel %vm1432_vm5, %v1431_v50, %v1425_v49 }
 0x4dc   : > { %v1429_v52 = vpop.permute.xlu1 %1428 }
 0x4dd   : > { %v1435_v53 = vsel %vm1434_vm6, %v1433_v51, %v1429_v52 }
 0x4de   : > { %2056 = vmatmul.mubr.msk.f32.vlgmr.msra.gmra.mxu0 %vm515_vm1, %v1435_v53 }
 0x4df   : > { %2085 = vmatprep.mubr.msk.f32.mxu0 %vm2303_vm0, %v2302_v0  ;;  %2070 = vmatpush3.msra.mxu0 %v1645_v25 }
 0x4e0   : > { %2071 = vmatprep.subr.mxu0 %v2302_v0 }
 0x4e1   : > { %2072 = vmatpush3.msra.mxu0 %v1644_v26 }
 0x4e2   : > { %2073 = vmatprep.subr.mxu0 %v2302_v0 }
 0x4e3   : > { %2074 = vmatpush3.msra.mxu0 %v1643_v27 }
 0x4e4   : > { %2075 = vmatprep.subr.mxu0 %v2302_v0 }
 0x4e5   : > { %2076 = vmatpush3.msra.mxu0 %v1642_v28 }
 0x4e6   : > { %2077 = vmatprep.subr.mxu0 %v2302_v0 }
 0x4e7   : > { %2078 = vmatpush3.msra.mxu0 %v1641_v29 }
 0x4e8   : > { %2079 = vmatprep.subr.mxu0 %v2302_v0 }
 0x4e9   : > { %2080 = vmatpush3.msra.mxu0 %v1640_v30 }
 0x4ea   : > { %2081 = vmatprep.subr.mxu0 %v2302_v0 }
 0x4eb   : > { %2082 = vmatpush3.msra.mxu0 %v1639_v31 }
 0x4ec   : > { %2083 = vmatprep.subr.mxu0 %v2302_v0 }
 0x4ed   : > { %2084 = vmatpush3.msra.mxu0 %v1638_v32 }
 0x59e   : > { %v1513_v56 = vpop.f32.mrf.mxu0 }
 0x59f   : > { %v1514_v57 = vadd.f32 %v1513_v56, %v1443_v55 }
 0x5a0   : > { %v2057_v58 = vpop.f32.mrf.mxu0 }
 0x5a1   : > { %v1517_v59 = vadd.f32 %v1514_v57, %v2568_v5  ;;  %v1550_v5 = vld [vmem:[%s2833_s8 + $0x8] sm:$0xff] }
 0x5a2   : > { %2063 = vmatpush3.msra.mxu1 %v1550_v5 }
 0x5a3   : > { %v1518_v60 = vsel %vm515_vm1, %v1517_v59, 0.0  ;;  %2064 = vmatprep.subr.mxu1 %v2302_v0  ;;  %v1649_v0 = vrot.slane %v2624_v21, %v1648_v42 }
 0x5a4   : > { %1519 = vadd.xlane.f32.xlu0 %v1518_v60  ;;  %2065 = vmatpush3.msra.mxu1 %v1549_v6 }
 0x62d   : > { %v1520_v61 = vpop.xlane.xlu0 %1519 }
 0x62e   : > { %v1522_v62 = vmul.f32 0.03125, %v1520_v61  ;;  %v1746_v61 = vsub.s32 7, %v2616_v17 }
 0x630   : > { %v1523_v63 = vsub.f32 %v1517_v59, %v1522_v62  ;;  %v1747_v62 = vrot.slane %v2624_v21, %v1746_v61 }
 0x632   : > { %v1524_v1 = vmul.f32 %v1523_v63, %v1523_v63  ;;  %v1542_v19 = vmul.f32 %v1541_v16, %v1523_v63 }
 0x634   : > { %v1525_v2 = vsel %vm515_vm1, %v1524_v1, 0.0 }
 0x635   : > { %1526 = vadd.xlane.f32.xlu1 %v1525_v2  ;;  %v1919_v2 = vld [vmem:[%s2836_s11 + $0x8] ss:$0 sm:$0xff] }
 0x6be   : > { %v1527_v7 = vpop.xlane.xlu1 %1526 }
 0x6bf   : > { %v1528_v8 = vmul.f32 0.032258064, %v1527_v7 }
 0x6c1   : > { %2164 = vrsqrt.f32 %v1528_v8  ;;  %vm1531_vm7 = vcmp.eq.f32.partialorder %v1528_v8, inf  ;;  %v1534_v11 = vand.u32 2147483648, %v1528_v8  ;;  %vm1533_vm8 = vcmp.eq.f32.partialorder %v1528_v8, 0.0 }
 0x6ce   : > { %v2165_v9 = vpop.eup %2164 }
 0x6cf   : > { %v1530_v10 = vmul.f32 %v2165_v9, %v1528_v8 }
 0x6d1   : > { %v1532_v12 = vsel %vm1531_vm7, %v1528_v8, %v1530_v10 }
 0x6d2   : > { %v1535_v13 = vsel %vm1533_vm8, %v1534_v11, %v1532_v12 }
 0x6d3   : > { %v1536_v14 = vadd.f32 1e-06, %v1535_v13 }
 0x6d5   : > { %2166 = vrcp.f32 %v1536_v14 }
 0x6e2   : > { %v2167_v22 = vpop.eup %2166 }
 0x6e3   : > { %v1543_v23 = vmul.f32 %v2167_v22, %v1542_v19 }
 0x6e5   : > { %v1548_v24 = vadd.f32 %v1547_v20, %v1543_v23 }
 0x6e7   : > { %2067 = vmatmul.mubr.msk.f32.vlgmr.msra.gmra.mxu1 %vm515_vm1, %v1548_v24 }
 0x7a7   : > { %v1629_v34 = vpop.f32.mrf.mxu1 }
 0x7a8   : > { %v1630_v35 = vadd.f32 %v1916_v33, %v1629_v34 }
 0x7a9   : > { %v2068_v36 = vpop.f32.mrf.mxu1 }
 0x7aa   : > { %v1634_v37 = vmul.f32 0.70710677, %v1630_v35  ;;  %v1633_v39 = vmul.f32 0.5, %v1630_v35 }
 0x7ac   : > { %2168 = verf.f32 %v1634_v37 }
 0x7b9   : > { %v2169_v38 = vpop.eup %2168 }
 0x7ba   : > { %v1636_v40 = vadd.f32 1.0, %v2169_v38 }
 0x7bc   : > { %v1637_v41 = vmul.f32 %v1636_v40, %v1633_v39 }
 0x7be   : > { %2086 = vmatmul.mubr.msk.f32.vlgmr.msra.gmra.mxu0 %vm1650_vm9, %v1637_v41 }
 0x87e   : > { %v1720_v43 = vpop.f32.mrf.mxu0 }
 0x87f   : > { %v1721_v44 = vadd.f32 %v1720_v43, %v1649_v0 }
 0x880   : > { %v2087_v45 = vpop.f32.mrf.mxu0 }
 0x881   : > { %v1724_v46 = vadd.f32 %v1721_v44, %v1548_v24 }
 0x883   : > { %v1725_v47 = vsel %vm515_vm1, %v1724_v46, 0.0 }
 0x884   : > { %1726 = vadd.xlane.f32.xlu0 %v1725_v47 }
 0x90d   : > { %v1727_v48 = vpop.xlane.xlu0 %1726 }
 0x90e   : > { %v1728_v49 = vmul.f32 0.03125, %v1727_v48 }
 0x910   : > { %v1729_v50 = vsub.f32 %v1724_v46, %v1728_v49 }
 0x912   : > { %v1730_v51 = vmul.f32 %v1729_v50, %v1729_v50  ;;  %v1748_v63 = vmul.f32 %v1747_v62, %v1729_v50 }
 0x914   : > { %v1731_v52 = vsel %vm515_vm1, %v1730_v51, 0.0 }
 0x915   : > { %1732 = vadd.xlane.f32.xlu0 %v1731_v52 }
 0x99e   : > { %v1733_v53 = vpop.xlane.xlu0 %1732 }
 0x99f   : > { %v1734_v54 = vmul.f32 0.032258064, %v1733_v53 }
 0x9a1   : > { %2170 = vrsqrt.f32 %v1734_v54  ;;  %vm1737_vm10 = vcmp.eq.f32.partialorder %v1734_v54, inf  ;;  %v1740_v57 = vand.u32 2147483648, %v1734_v54  ;;  %vm1739_vm11 = vcmp.eq.f32.partialorder %v1734_v54, 0.0 }
 0x9ae   : > { %v2171_v55 = vpop.eup %2170 }
 0x9af   : > { %v1736_v56 = vmul.f32 %v2171_v55, %v1734_v54 }
 0x9b1   : > { %v1738_v58 = vsel %vm1737_vm10, %v1734_v54, %v1736_v56 }
 0x9b2   : > { %v1741_v59 = vsel %vm1739_vm11, %v1740_v57, %v1738_v58 }
 0x9b3   : > { %v1742_v60 = vadd.f32 1e-06, %v1741_v59 }
 0x9b5   : > { %2172 = vrcp.f32 %v1742_v60 }
 0x9c2   : > { %v2173_v1 = vpop.eup %2172 }
 0x9c3   : > { %v1749_v3 = vmul.f32 %v2173_v1, %v1748_v63 }
 0x9c5   : > { %v1754_v4 = vadd.f32 %v1919_v2, %v1749_v3 }
 0x9c7   : > { %1755 = vst.msk [vmem:[%s491_s14] sm:$0xff] %vm515_vm1, %v1754_v4 }
 0x9c8   : > { %2243 = shalt.err (!%p2240_p9)
}
 0x9c9   : > { %s2244_s20 = scalar_lea.hbm %s1768_s16, 128  ;;  %s2248_s26 = scalar_lea.hbm %s2837_s12, 256 }
 0x9ca   : > { %p2245_p0 = scmp.ne.s32.totalorder %s1768_s16, %s2244_s20  ;;  %p2249_p1 = scmp.lt.s32.totalorder %s1768_s16, %s2837_s12 }
 0x9cb   : > { %p2250_p6 = scmp.lt.s32.totalorder %s2248_s26, %s2244_s20 }
 0x9cc   : > { %p2246_p11 = pnand %p2245_p0, %p2868_p7 }
 0x9cd   : > { %p2251_p13 = por %p2250_p6, %p2249_p1 }
 0x9ce   : > { %p2247_p12 = pneg %p2246_p11 }
 0x9d0   : > { %p2252_p3 = pnand %p2251_p13, %p2247_p12 }
 0x9d2   : > { %2255 = shalt.err (!%p2252_p3)
}
 0x9d3   : > { %2092 = dma.vmem_to_hbm [thread:$0]  (%p2868_p7), %s1771_s17, 128, %s1768_s16, %s1757_s27  }
 0x9d4 PF: > { %s2869_s14 = sld [smem:[#allocation11_spill]]  ;;  %p2872_p10 = scmp.ge.s32.totalorder %s2298_s24, 2 }
 0x9d5   : > { %s2870_s13 = sld [smem:[#allocation15_spill]] }
 0x9da   : > { %s1782_s1 = sand.u32 1, %s2869_s14  }
 0x9db   : > { %p2871_p8 = scmp.ne.s32.totalorder %s2870_s13, 0  ;;  %s1783_s23 = scalar_lea.sflag [#allocation4], %s1782_s1 }
 0x9dd   : > { %p2102_p2 = pnand %p2872_p10, %p2871_p8 }
 0x9df   : > { %p2103_p4 = pneg %p2102_p2 }
 0x9e1   : > { %2281 = dma.done.wait (%p2103_p4), %s1783_s23, 128  }
 0x9e2   : > { %2283 = vsyncadd (%p2103_p4), %s1783_s23, 4294967168  ;;  %s2873_s24 = sld [smem:[#allocation13_spill]]  ;;  %s2876_s21 = smov %s2290_s22 }
 0x9e3   : > { %s2874_s29 = sld [smem:[#allocation12_spill]] }
 0x9e4   : > { %s2875_s23 = sld [smem:[#allocation14_spill]] }
 0x9e8   : > { %p28_p5 = scmp.ge.s32.totalorder %s2873_s24, 4  }
 0x9e9   : > { %s2877_s22 = smov %s2874_s29 }
 0x9ea   :  { %30 = sbr.rel (!%p28_p5) target bundleno = 9 (0x9), region = 132 }
 0x9ef   :  { %1788 = vsyncpa [#allocation3], 1 }
 0x9f0   :  { %1790 = vsyncpa [#allocation3 + $0x1], 1 }
 0x9f1   :  { %1791 = vsyncpa [#allocation6], 1 }
 0x9f2   :  { %1793 = vsyncpa [#allocation6 + $0x1], 1 }
 0x9f3   :  { %1794 = vsyncpa [#allocation4], 1 }
 0x9f4   :  { %1796 = vsyncpa [#allocation4 + $0x1], 1 }

// kernel: run.1
= control target key start
LH: loop header
LB: loop body
LE: loop exit
PB: predicated region body
PF: predicated region fallthrough
CT: control target
= control target key end

     0   :  { %s2825_s0 = inlined_call_operand.vmem [shape: f32[2,8,32], index: 0, kind: input, shape index: {}]   ;;  %s2826_s1 = inlined_call_operand.hbm [shape: f32[2,8,32], index: 1, kind: input, shape index: {}]   ;;  %s2827_s2 = inlined_call_operand.hbm [shape: f32[2,8,32], index: 2, kind: input, shape index: {}]   ;;  %s2828_s3 = inlined_call_operand.vmem [shape: s8[2,8,8], index: 3, kind: input, shape index: {}]   ;;  %s2829_s4 = inlined_call_operand.vmem [shape: f32[32,32], index: 4, kind: input, shape index: {}]   ;;  %s2830_s5 = inlined_call_operand.vmem [shape: f32[32,32], index: 5, kind: input, shape index: {}]   ;;  %s2831_s6 = inlined_call_operand.vmem [shape: f32[32,32], index: 6, kind: input, shape index: {}]   ;;  %s2832_s7 = inlined_call_operand.vmem [shape: f32[32,32], index: 7, kind: input, shape index: {}]   ;;  %s2833_s8 = inlined_call_operand.vmem [shape: f32[32,64], index: 8, kind: input, shape index: {}]   ;;  %s2834_s9 = inlined_call_operand.vmem [shape: f32[64,32], index: 9, kind: input, shape index: {}]   ;;  %s2835_s10 = inlined_call_operand.vmem [shape: f32[1,64], index: 10, kind: input, shape index: {}]   ;;  %s2836_s11 = inlined_call_operand.vmem [shape: f32[9,32], index: 11, kind: input, shape index: {}]   ;;  %s2837_s12 = inlined_call_operand.hbm [shape: f32[2,8,32], index: 12, kind: output, shape index: {}]  }
   0x1   :  { %2847 = sst [smem:[#allocation16_spill]] %s2826_s1 }
   0x2   :  { %17 = vsyncpa [#allocation3], 0 }
   0x3   :  { %19 = vsyncpa [#allocation3 + $0x1], 0 }
   0x4   :  { %20 = vsyncpa [#allocation6], 0 }
   0x5   :  { %22 = vsyncpa [#allocation6 + $0x1], 0 }
   0x6   :  { %23 = vsyncpa [#allocation4], 0 }
   0x7   :  { %25 = vsyncpa [#allocation4 + $0x1], 0  ;;  %s2377_s21 = smov 0   ;;  %s2379_s22 = smov 0  }
   0x8   :  { %s2381_s23 = smov 0   ;;  %s2383_s24 = smov 0  }
   0x9 LB: > { %2848 = sst [smem:[#allocation11_spill]] %s2286_s21  ;;  %s2398_s25 = sadd.s32 4294967295, %s2298_s24   ;;  %s2298_s24 = sphi %s2383_s24, %s2873_s24   ;;  %s2294_s23 = sphi %s2381_s23, %s2875_s23   ;;  %s2290_s22 = sphi %s2379_s22, %s2877_s22   ;;  %s2286_s21 = sphi %s2377_s21, %s2876_s21  }
   0xa   : > { %2849 = sst [smem:[#allocation12_spill]] %s2294_s23  ;;  %s1887_s26 = sadd.s32 4294967294, %s2298_s24  }
   0xb   : > { %s2402_s27 = sadd.s32 1, %s2298_s24   ;;  %s64_s28 = sadd.s32 1, %s2294_s23 }
   0xc   : > { %2850 = sst [smem:[#allocation13_spill]] %s2402_s27  ;;  %s61_s29 = ssub.s32 %s2298_s24, %s2402_s27 }
   0xd   : > { %p71_p0 = scmp.ne.s32.totalorder %s2294_s23, %s2290_s22  ;;  %p62_p1 = scmp.eq.s32.totalorder %s61_s29, 0 }
   0xe   : > { %p72_p2 = scmp.eq.s32.totalorder %s2298_s24, 0  ;;  %p77_p3 = scmp.ne.s32.totalorder %s2290_s22, %s2286_s21 }
   0xf   : > { %p78_p4 = scmp.eq.s32.totalorder %s2398_s25, 0  ;;  %p321_p7 = scmp.eq.s32.totalorder %s2398_s25, 1 }
  0x10   : > { %s2414_s30 = scalar_select %p62_p1, %s2294_s23, %s64_s28  }
  0x11   : > { %p2416_p5 = por %p72_p2, %p71_p0  ;;  %p2420_p6 = por %p78_p4, %p77_p3 }
  0x12   : > { %2851 = sst [smem:[#allocation14_spill]] %s2414_s30  ;;  %p327_p8 = scmp.eq.s32.totalorder %s1887_s26, 1 }
  0x13   : > { %s2853_s14 = scalar_select %p2420_p6, 1, 0 }
  0x14   : > { %p2105_p10 = scmp.lt.s32.totalorder %s2298_s24, 2  ;;  %p2427_p11 = por %p321_p7, %p71_p0 }
  0x15   : > { %p2431_p12 = por %p327_p8, %p77_p3  ;;  %s2436_s17 = sand.u32 1, %s2294_s23  }
  0x16   : > { %s2854_s15 = scalar_select %p2427_p11, 1, 0 }
  0x17   : > { %s2855_s16 = scalar_select %p2431_p12, 1, 0 }
  0x18   : > { %s2840_s18 = sshll.u32 %s2298_s24, 7  ;;  %s2839_s19 = sshll.u32 %s2436_s17, 3 }
  0x19   : > { %2856 = sst [smem:[#allocation15_spill]] %s2855_s16  ;;  %s382_s29 = scalar_lea.vmem [#allocation2], %s2839_s19 }
  0x1a   : > { %s2857_s1 = sld [smem:[#allocation16_spill]]  ;;  %s389_s30 = sshll.u32 %s382_s29, 4  ;;  %s2455_s30 = int_to_ptr.vmem [resolvable:$true] %s389_s30 }
  0x1b   : > { %p2451_p13 = pnand %p2105_p10, %p2416_p5  ;;  %s379_s20 = scalar_lea.sflag [#allocation3], %s2436_s17 }
  0x1d   : > { %p2176_p3 = pneg %p2451_p13 }
  0x20   : > { %s2445_s28 = scalar_lea.hbm %s2857_s1, %s2840_s18  ;;  %s2179_s19 = scalar_lea.hbm %s2857_s1, 256 }
  0x21   : > { %s2174_s26 = scalar_lea.hbm %s2445_s28, 128  ;;  %p2180_p5 = scmp.lt.s32.totalorder %s2445_s28, %s2857_s1 }
  0x22   : > { %p2175_p2 = scmp.ne.s32.totalorder %s2445_s28, %s2174_s26  ;;  %p2181_p8 = scmp.lt.s32.totalorder %s2179_s19, %s2174_s26 }
  0x24   : > { %p2177_p4 = pnand %p2176_p3, %p2175_p2  ;;  %p2182_p10 = por %p2181_p8, %p2180_p5 }
  0x26   : > { %p2178_p7 = pneg %p2177_p4 }
  0x28   : > { %p2183_p9 = pnand %p2182_p10, %p2178_p7 }
  0x2a   : > { %2186 = shalt.err (!%p2183_p9)
}
  0x2b   : > { %s2187_s16 = scalar_lea.vmem %s2455_s30, 128  ;;  %s2300_s13 = smov [#allocation2]  }
  0x2c   : > { %p2188_p0 = scmp.ne.s32.totalorder %s2455_s30, %s2187_s16  ;;  %s2192_s29 = sshll.u32 %s2300_s13, 4  ;;  %s2193_s29 = int_to_ptr.vmem [resolvable:$false] %s2192_s29 }
  0x2d   : > { %s2194_s21 = scalar_lea.vmem %s2193_s29, 256  ;;  %p2195_p1 = scmp.lt.s32.totalorder %s2455_s30, %s2193_s29 }
  0x2e   : > { %p2190_p2 = pnand %p2188_p0, %p2176_p3  ;;  %p2196_p12 = scmp.lt.s32.totalorder %s2194_s21, %s2187_s16 }
  0x30   : > { %p2191_p4 = pneg %p2190_p2  ;;  %p2197_p11 = por %p2196_p12, %p2195_p1 }
  0x32   : > { %p2198_p5 = pnand %p2197_p11, %p2191_p4 }
  0x34   : > { %2201 = shalt.err (!%p2198_p5)
}
  0x35   : > { %2097 = dma.hbm_to_vmem [thread:$0]  (!%p2451_p13), %s2445_s28, 128, %s2455_s30, %s379_s20  }
  0x36   : > { %p2859_p9 = scmp.lt.s32.totalorder %s2298_s24, 3  ;;  %p2860_p0 = scmp.ge.s32.totalorder %s2298_s24, 1 }
  0x37   : > { %s2862_s21 = sshll.u32 %s2298_s24, 7  ;;  %s2863_s26 = sshll.u32 %s2436_s17, 3 }
  0x38   : > { %p2488_p7 = pnand %p2860_p0, %p2859_p9  ;;  %s2497_s19 = scalar_lea.hbm %s2827_s2, %s2862_s21 }
  0x39   : > { %s400_s13 = scalar_lea.vmem [#allocation5], %s2863_s26  ;;  %s397_s30 = scalar_lea.sflag [#allocation6], %s2436_s17 }
  0x3a   : > { %s2861_s27 = scalar_select %p2488_p7, 1, 0 }
  0x3b   : > { %s407_s29 = sshll.u32 %s400_s13, 4  ;;  %s2202_s28 = scalar_lea.hbm %s2497_s19, 128  ;;  %s408_s29 = int_to_ptr.vmem [resolvable:$true] %s407_s29 }
  0x3c   : > { %p2203_p11 = scmp.ne.s32.totalorder %s2497_s19, %s2202_s28  ;;  %s2207_s16 = scalar_lea.hbm %s2827_s2, 256 }
  0x3d   : > { %p2208_p8 = scmp.lt.s32.totalorder %s2497_s19, %s2827_s2  ;;  %p2209_p10 = scmp.lt.s32.totalorder %s2207_s16, %s2202_s28 }
  0x3e   : > { %p2205_p12 = pnand %p2203_p11, %p2176_p3 }
  0x3f   : > { %p2210_p2 = por %p2209_p10, %p2208_p8 }
  0x40   : > { %p2206_p1 = pneg %p2205_p12 }
  0x42   : > { %p2211_p4 = pnand %p2210_p2, %p2206_p1 }
  0x44   : > { %2214 = shalt.err (!%p2211_p4)
}
  0x45   : > { %s2215_s26 = scalar_lea.vmem %s408_s29, 128  ;;  %s2301_s17 = smov [#allocation5]  }
  0x46   : > { %p2216_p5 = scmp.ne.s32.totalorder %s408_s29, %s2215_s26  ;;  %s2220_s13 = sshll.u32 %s2301_s17, 4  ;;  %s2221_s13 = int_to_ptr.vmem [resolvable:$false] %s2220_s13 }
  0x47   : > { %s2222_s1 = scalar_lea.vmem %s2221_s13, 256  ;;  %p2223_p11 = scmp.lt.s32.totalorder %s408_s29, %s2221_s13 }
  0x48   : > { %p2218_p9 = pnand %p2216_p5, %p2176_p3  ;;  %p2224_p12 = scmp.lt.s32.totalorder %s2222_s1, %s2215_s26 }
  0x4a   : > { %p2219_p0 = pneg %p2218_p9  ;;  %p2225_p6 = por %p2224_p12, %p2223_p11 }
  0x4c   : > { %p2226_p7 = pnand %p2225_p6, %p2219_p0 }
  0x4e   : > { %2229 = shalt.err (!%p2226_p7)
}
  0x4f   : > { %2100 = dma.hbm_to_vmem [thread:$0]  (!%p2451_p13), %s2497_s19, 128, %s408_s29, %s397_s30  }
  0x50   : > { %p2864_p1 = scmp.ne.s32.totalorder %s2861_s27, 0 }
  0x51   : > { %s2523_s28 = sand.u32 (!%p2864_p1), 1, %s2290_s22   ;;  %p2865_p6 = scmp.ne.s32.totalorder (!%p2864_p1), %s2853_s14, 0 }
  0x52   : > { %423 = sbr.rel (%p2864_p1) target bundleno = 2516 (0x9d4), region = 68  ;;  %s2526_s20 = sshll.u32 (!%p2864_p1), %s2523_s28, 3 }
  0x53   : > { %s426_s16 = scalar_lea.sflag (!%p2864_p1), [#allocation3], %s2523_s28  ;;  %s429_s21 = scalar_lea.vmem (!%p2864_p1), [#allocation2], %s2526_s20 }
  0x57   : > { %2273 = dma.done.wait (%p2865_p6), %s426_s16, 128  }
  0x58   : > { %2275 = vsyncadd (%p2865_p6), %s426_s16, 4294967168  ;;  %s435_s23 = scalar_lea.sflag [#allocation6], %s2523_s28  ;;  %s438_s27 = scalar_lea.vmem [#allocation5], %s2526_s20 }
  0x59   : > { %2277 = dma.done.wait (%p2865_p6), %s435_s23, 128  }
  0x5a   : > { %2279 = vsyncadd (%p2865_p6), %s435_s23, 4294967168  ;;  %p492_p13 = scmp.lt.s32.totalorder %s2398_s25, 1  ;;  %v2302_v0 = vmov 0.0   ;;  %vm2303_vm0 = vmmov 0   ;;  %v510_v1 = vld [vmem:[%s2829_s4 + $0x18] sm:$0xff]  ;;  %v509_v2 = vld [vmem:[%s2829_s4 + $0x10] sm:$0xff]  ;;  %v511_v15 = vlaneseq }
  0x5b   : > { %1974 = vmatprep.subr.mxu1 %v2302_v0  ;;  %1982 = vmatprep.mubr.msk.f32.mxu1 %vm2303_vm0, %v2302_v0  ;;  %v508_v3 = vld [vmem:[%s2829_s4 + $0x8] sm:$0xff]  ;;  %v507_v4 = vld [vmem:[%s2829_s4] sm:$0xff]  ;;  %vm515_vm1 = vcmask 261120   ;;  %v592_v6 = vld [vmem:[%s2830_s5 + $0x18] sm:$0xff]  ;;  %vm775_vm2 = vcmask 64512   ;;  %s2306_s29 = smov 104  }
  0x5c   : > { %s2545_s19 = scalar_select %p492_p13, %s2398_s25, 1  ;;  %1996 = vmatprep.subr.mxu0 %v2302_v0  ;;  %2004 = vmatprep.mubr.msk.f32.mxu0 %vm2303_vm0, %v2302_v0  ;;  %v591_v7 = vld [vmem:[%s2830_s5 + $0x10] sm:$0xff]  ;;  %v590_v8 = vld [vmem:[%s2830_s5 + $0x8] sm:$0xff]  ;;  %v589_v9 = vld [vmem:[%s2830_s5] sm:$0xff]  ;;  %v2616_v17 = vshrl.u32 %v511_v15, 7  ;;  %v2307_v41 = vmov 0  }
  0x5d   : > { %1975 = vmatpush3.msra.mxu1 %v510_v1  ;;  %v505_v10 = vld [vmem:[%s429_s21] sm:$0xff]  ;;  %v673_v11 = vld [vmem:[%s2831_s6 + $0x18] sm:$0xff]  ;;  %v672_v12 = vld [vmem:[%s2831_s6 + $0x10] sm:$0xff]  ;;  %s2310_s18 = smov 24   ;;  %vm1432_vm5 = vcmask 130048   ;;  %vm1434_vm6 = vcmask 195584  }
  0x5e   : > { %s1898_s14 = sshll.u32 %s2545_s19, 3  ;;  %1976 = vmatprep.subr.mxu1 %v2302_v0  ;;  %1997 = vmatpush3.msra.mxu0 %v673_v11  ;;  %v671_v13 = vld [vmem:[%s2831_s6 + $0x8] sm:$0xff]  ;;  %v670_v14 = vld [vmem:[%s2831_s6] sm:$0xff]  ;;  %v506_v16 = vld [vmem:[%s438_s27] sm:$0xff]  ;;  %v595_v19 = vsub.s32 1, %v2616_v17  ;;  %v513_v22 = vsub.s32 0, %v2616_v17 }
  0x5f   : > { %s495_s23 = scalar_lea.vmem %s2825_s0, %s1898_s14  ;;  %1977 = vmatpush3.msra.mxu1 %v509_v2  ;;  %1998 = vmatprep.subr.mxu0 %v2302_v0  ;;  %v2624_v21 = vld [vmem:[%s2836_s11] sm:$0xff]  ;;  %s2304_s27 = smov 112   ;;  %v676_v35 = vsub.s32 2, %v2616_v17  ;;  %vm1650_vm9 = vcmask 523264  }
  0x60   : > { %1978 = vmatprep.subr.mxu1 %v2302_v0  ;;  %v2568_v5 = vld [vmem:[%s495_s23] sm:$0xff]  ;;  %1999 = vmatpush3.msra.mxu0 %v672_v12  ;;  %v596_v23 = vrot.slane %v2624_v21, %v595_v19  ;;  %v514_v25 = vrot.slane %v2624_v21, %v513_v22  ;;  %s2305_s23 = smov 120   ;;  %s1899_s30 = sshll.u32 %s2545_s19, 1 }
  0x61   : > { %1979 = vmatpush3.msra.mxu1 %v508_v3  ;;  %2000 = vmatprep.subr.mxu0 %v2302_v0  ;;  %v677_v36 = vrot.slane %v2624_v21, %v676_v35  ;;  %s499_s21 = scalar_lea.vmem %s2828_s3, %s1899_s30  ;;  %s2309_s30 = smov 16  }
  0x62   : > { %1980 = vmatprep.subr.mxu1 %v2302_v0  ;;  %2001 = vmatpush3.msra.mxu0 %v671_v13  ;;  %v1072_v39 = vld [vmem:[%s499_s21] sm:$0x3]  ;;  %s1921_s19 = sshll.u32 %s2398_s25, 7  ;;  %s491_s14 = scalar_lea.vmem [#allocation7], %s2526_s20 }
  0x63   : > { %1981 = vmatpush3.msra.mxu1 %v507_v4  ;;  %2002 = vmatprep.subr.mxu0 %v2302_v0  ;;  %vm1073_vm3 = vnez %v1072_v39  ;;  %v1438_v39 = vld [vmem:[%s2832_s7 + $0x10] sm:$0xff]  ;;  %s1770_s17 = sshll.u32 %s491_s14, 4  ;;  %s1768_s16 = scalar_lea.hbm %s2837_s12, %s1921_s19  ;;  %s1771_s17 = int_to_ptr.vmem [resolvable:$true] %s1770_s17 }
  0x64   : > { %1983 = vmatmul.mubr.msk.f32.vlgmr.msra.gmra.mxu1 %vm515_vm1, %v2568_v5  ;;  %1985 = vmatprep.subr.mxu1 %v2302_v0  ;;  %v1074_v42 = vsel %vm1073_vm3, 16843009, %v2307_v41  ;;  %v1436_v41 = vld [vmem:[%s2832_s7] sm:$0xff]  ;;  %p2868_p7 = scmp.ne.s32.totalorder %s2854_s15, 0 }
  0x65   : > { %1986 = vmatpush3.msra.mxu1 %v592_v6  ;;  %1993 = vmatprep.mubr.msk.f32.mxu1 %vm2303_vm0, %v2302_v0  ;;  %v1075_v43 = vunpack.c.0.s8 %v1074_v42 }
  0x66   : > { %1987 = vmatprep.subr.mxu1 %v2302_v0  ;;  %2003 = vmatpush3.msra.mxu0 %v670_v14 }
  0x67   : > { %1988 = vmatpush3.msra.mxu1 %v591_v7  ;;  %2017 = vmatprep.subr.mxu0 %v2302_v0  ;;  %vm2662_vm4 = vcmp.ne.s32.totalorder %v1075_v43, 0 }
  0x68   : > { %1989 = vmatprep.subr.mxu1 %v2302_v0  ;;  %2005 = vmatmul.mubr.msk.f32.vlgmr.msra.gmra.mxu0 %vm515_vm1, %v506_v16 }
  0x69   : > { %1990 = vmatpush3.msra.mxu1 %v590_v8  ;;  %2019 = vmatprep.mubr.msk.f32.mxu0 %vm2303_vm0, %v2302_v0 }
  0x6a   : > { %1991 = vmatprep.subr.mxu1 %v2302_v0 }
  0x6b   : > { %1992 = vmatpush3.msra.mxu1 %v589_v9 }
  0x6c   : > { %1994 = vmatmul.mubr.msk.f32.vlgmr.msra.gmra.mxu1 %vm515_vm1, %v505_v10  ;;  %2007 = vmatprep.subr.mxu1 %v2302_v0 }
  0x6d   : > { %2009 = vmatprep.mubr.msk.f32.mxu1 %vm2303_vm0, %v2302_v0 }
 0x124   : > { %v585_v18 = vpop.f32.mrf.mxu1 }
 0x125   : > { %v586_v28 = vadd.f32 %v585_v18, %v514_v25 }
 0x126   : > { %v1984_v20 = vpop.f32.mrf.mxu1 }
 0x128   : > { %v747_v37 = vpop.f32.mrf.mxu0 }
 0x129   : > { %v748_v38 = vadd.f32 %v747_v37, %v677_v36 }
 0x12a   : > { %v2006_v40 = vpop.f32.mrf.mxu0 }
 0x12b   : > { %v1437_v40 = vld [vmem:[%s2832_s7 + $0x8] sm:$0xff] }
 0x12c   : > { %v666_v24 = vpop.f32.mrf.mxu1 }
 0x12d   : > { %v667_v26 = vadd.f32 %v666_v24, %v596_v23 }
 0x12e   : > { %v1995_v27 = vpop.f32.mrf.mxu1 }
 0x12f   : > { %761 = vrot.lane.b32.xlu1 %v667_v26, %s2304_s27  ;;  %759 = vrot.lane.b32.xlu0 %v667_v26, %s2305_s23 }
 0x130   : > { %2008 = vmatpush3.xpose.msk.msra.mxu1 %vm775_vm2, %v667_v26 }
 0x131   : > { %2012 = vmatprep.subr.mxu1 %v2302_v0 }
 0x133   : > { %2010 = vmatmul.mubr.msk.f32.vlgmr.msra.gmra.mxu1 %vm775_vm2, %v586_v28  ;;  %763 = vrot.lane.b32.xlu1 %v667_v26, %s2306_s29 }
 0x134   : > { %752 = vrot.lane.b32.xlu0 %v586_v28, %s2305_s23  ;;  %2014 = vmatprep.mubr.msk.f32.mxu1 %vm2303_vm0, %v2302_v0 }
 0x137   : > { %756 = vrot.lane.b32.xlu1 %v586_v28, %s2306_s29 }
 0x138   : > { %754 = vrot.lane.b32.xlu0 %v586_v28, %s2304_s27 }
 0x1a1   : > { %v762_v29 = vpop.permute.xlu1 %761  ;;  %v760_v30 = vpop.permute.xlu0 %759 }
 0x1a2   : > { %2013 = vmatpush3.xpose.msk.msra.mxu1 %vm775_vm2, %v760_v30  ;;  %2018 = vmatpush3.xpose.msk.msra.mxu0 %vm775_vm2, %v762_v29 }
 0x1a3   : > { %2022 = vmatprep.subr.mxu1 %v2302_v0  ;;  %2027 = vmatprep.subr.mxu0 %v2302_v0 }
 0x1a5   : > { %v764_v31 = vpop.permute.xlu1 %763 }
 0x1a6   : > { %v753_v32 = vpop.permute.xlu0 %752 }
 0x1a7   : > { %2015 = vmatmul.mubr.msk.f32.vlgmr.msra.gmra.mxu1 %vm775_vm2, %v753_v32 }
 0x1a8   : > { %2023 = vmatpush3.xpose.msk.msra.mxu1 %vm775_vm2, %v764_v31  ;;  %2024 = vmatprep.mubr.msk.f32.mxu1 %vm2303_vm0, %v2302_v0 }
 0x1a9   : > { %v757_v33 = vpop.permute.xlu1 %756  ;;  %2032 = vmatprep.subr.mxu1 %v2302_v0 }
 0x1aa   : > { %v755_v34 = vpop.permute.xlu0 %754 }
 0x1ab   : > { %2020 = vmatmul.mubr.msk.f32.vlgmr.msra.gmra.mxu0 %vm775_vm2, %v755_v34  ;;  %2025 = vmatmul.mubr.msk.f32.vlgmr.msra.gmra.mxu1 %vm775_vm2, %v757_v33 }
 0x1ac   : > { %2029 = vmatprep.mubr.msk.f32.mxu0 %vm2303_vm0, %v2302_v0  ;;  %2034 = vmatprep.mubr.msk.f32.mxu1 %vm2303_vm0, %v2302_v0 }
 0x1ad   : > { %2028 = vmatpush3.msra.mxu0 %v748_v38 }
 0x1ae   : > { %2037 = vmatprep.subr.mxu0 %v2302_v0 }
 0x1f3   : > { %v846_v45 = vpop.f32.mrf.mxu1 }
 0x1f4   : > { %v1079_v46 = vsel %vm2662_vm4, 32752.0, %v846_v45 }
 0x1f5   : > { %v2011_v47 = vpop.f32.mrf.mxu1  ;;  %v1083_v48 = vsel %vm775_vm2, %v1079_v46, -inf }
 0x1f6   : > { %1084 = vmax.xlane.f32.xlu0 %v1083_v48 }
 0x267   : > { %v920_v49 = vpop.f32.mrf.mxu1 }
 0x268   : > { %v1080_v50 = vsel %vm2662_vm4, 32752.0, %v920_v49 }
 0x269   : > { %v2016_v51 = vpop.f32.mrf.mxu1  ;;  %v1086_v52 = vsel %vm775_vm2, %v1080_v50, -inf }
 0x26a   : > { %1087 = vmax.xlane.f32.xlu1 %v1086_v52 }
 0x26b   : > { %v994_v53 = vpop.f32.mrf.mxu0  ;;  %v1068_v54 = vpop.f32.mrf.mxu1 }
 0x26c   : > { %v1081_v55 = vsel %vm2662_vm4, 32752.0, %v994_v53  ;;  %v1082_v59 = vsel %vm2662_vm4, 32752.0, %v1068_v54  ;;  %v1442_v54 = vsub.s32 3, %v2616_v17 }
 0x26d   : > { %v2021_v56 = vpop.f32.mrf.mxu0  ;;  %v2026_v57 = vpop.f32.mrf.mxu1  ;;  %v1089_v58 = vsel %vm775_vm2, %v1081_v55, -inf  ;;  %v1092_v60 = vsel %vm775_vm2, %v1082_v59, -inf }
 0x26e   : > { %1090 = vmax.xlane.f32.xlu0 %v1089_v58 }
 0x272   : > { %1093 = vmax.xlane.f32.xlu0 %v1092_v60 }
 0x27b   : > { %766 = vrot.lane.b32.xlu1 %v748_v38, %s2305_s23  ;;  %s2230_s23 = scalar_lea.vmem %s1771_s17, 128 }
 0x27c   : > { %p2231_p3 = scmp.ne.s32.totalorder %s1771_s17, %s2230_s23 }
 0x27e   : > { %p2232_p8 = pnand %p2231_p3, %p2868_p7 }
 0x27f   : > { %v1085_v61 = vpop.xlane.xlu0 %1084 }
 0x280   : > { %v1095_v62 = vsub.f32 %v1079_v46, %v1085_v61  ;;  %p2233_p10 = pneg %p2232_p8 }
 0x282   : > { %v1099_v63 = vmul.f32 1.442695, %v1095_v62 }
 0x284   : > { %2148 = vpow2.f32 %v1099_v63 }
 0x291   : > { %v2149_v1 = vpop.eup %2148 }
 0x292   : > { %v1107_v2 = vsel %vm775_vm2, %v2149_v1, 0.0 }
 0x29f   : > { %1108 = vadd.xlane.f32.xlu1 %v1107_v2 }
 0x2f3   : > { %v1088_v3 = vpop.xlane.xlu1 %1087 }
 0x2f4   : > { %v1096_v4 = vsub.f32 %v1080_v50, %v1088_v3  ;;  %v1552_v3 = vld [vmem:[%s2833_s8 + $0x18] sm:$0xff] }
 0x2f6   : > { %v1101_v6 = vmul.f32 1.442695, %v1096_v4  ;;  %v1551_v4 = vld [vmem:[%s2833_s8 + $0x10] sm:$0xff] }
 0x2f7   : > { %v1091_v7 = vpop.xlane.xlu0 %1090  ;;  %v767_v8 = vpop.permute.xlu1 %766 }
 0x2f8   : > { %2150 = vpow2.f32 %v1101_v6  ;;  %v1097_v9 = vsub.f32 %v1081_v55, %v1091_v7  ;;  %2033 = vmatpush3.msra.mxu1 %v767_v8  ;;  %v1443_v55 = vrot.slane %v2624_v21, %v1442_v54  ;;  %v1549_v6 = vld [vmem:[%s2833_s8] sm:$0xff] }
 0x2f9   : > { %2042 = vmatprep.subr.mxu1 %v2302_v0 }
 0x2fa   : > { %v1103_v10 = vmul.f32 1.442695, %v1097_v9 }
 0x2fb   : > { %v1094_v11 = vpop.xlane.xlu0 %1093 }
 0x2fc   : > { %2152 = vpow2.f32 %v1103_v10  ;;  %v1098_v12 = vsub.f32 %v1082_v59, %v1094_v11 }
 0x2fe   : > { %v1105_v13 = vmul.f32 1.442695, %v1098_v12 }
 0x300   : > { %2154 = vpow2.f32 %v1105_v13 }
 0x305   : > { %v2151_v14 = vpop.eup %2150 }
 0x306   : > { %v1110_v15 = vsel %vm775_vm2, %v2151_v14, 0.0 }
 0x307   : > { %1111 = vadd.xlane.f32.xlu0 %v1110_v15  ;;  %v1540_v15 = vsub.s32 5, %v2616_v17 }
 0x309   : > { %v2153_v16 = vpop.eup %2152 }
 0x30a   : > { %v1113_v18 = vsel %vm775_vm2, %v2153_v16, 0.0 }
 0x30b   : > { %1114 = vadd.xlane.f32.xlu1 %v1113_v18  ;;  %v1546_v18 = vsub.s32 6, %v2616_v17 }
 0x30d   : > { %v2155_v19 = vpop.eup %2154 }
 0x30e   : > { %v1116_v20 = vsel %vm775_vm2, %v2155_v19, 0.0 }
 0x30f   : > { %1117 = vadd.xlane.f32.xlu0 %v1116_v20  ;;  %v1547_v20 = vrot.slane %v2624_v21, %v1546_v18 }
 0x31c   : > { %772 = vrot.lane.b32.xlu1 %v748_v38, %s2306_s29  ;;  %s2308_s29 = smov 8  }
 0x325   : > { %769 = vrot.lane.b32.xlu0 %v748_v38, %s2304_s27  ;;  %v1439_v38 = vld [vmem:[%s2832_s7 + $0x18] sm:$0xff]  ;;  %s1757_s27 = scalar_lea.sflag [#allocation4], %s2523_s28 }
 0x328   : > { %v1109_v22 = vpop.xlane.xlu1 %1108 }
 0x329   : > { %2156 = vrcp.f32 %v1109_v22 }
 0x336   : > { %v2157_v23 = vpop.eup %2156 }
 0x337   : > { %v1123_v24 = vmul.f32 %v2157_v23, %v2149_v1 }
 0x339   : > { %2030 = vmatmul.mubr.msk.f32.vlgmr.msra.gmra.mxu0 %vm775_vm2, %v1123_v24 }
 0x33a   : > { %2039 = vmatprep.mubr.msk.f32.mxu0 %vm2303_vm0, %v2302_v0 }
 0x390   : > { %v1112_v25 = vpop.xlane.xlu0 %1111 }
 0x391   : > { %2158 = vrcp.f32 %v1112_v25  ;;  %v1645_v25 = vld [vmem:[%s2834_s9 + $0x38] sm:$0xff] }
 0x394   : > { %v1115_v26 = vpop.xlane.xlu1 %1114 }
 0x395   : > { %2160 = vrcp.f32 %v1115_v26  ;;  %v1644_v26 = vld [vmem:[%s2834_s9 + $0x30] sm:$0xff] }
 0x398   : > { %v1118_v27 = vpop.xlane.xlu0 %1117  ;;  %v773_v31 = vpop.permute.xlu1 %772 }
 0x399   : > { %2162 = vrcp.f32 %v1118_v27  ;;  %v1643_v27 = vld [vmem:[%s2834_s9 + $0x28] sm:$0xff] }
 0x39c   : > { %v770_v28 = vpop.permute.xlu0 %769 }
 0x39d   : > { %2038 = vmatpush3.msra.mxu0 %v770_v28  ;;  %v1642_v28 = vld [vmem:[%s2834_s9 + $0x20] sm:$0xff] }
 0x39e   : > { %v2159_v29 = vpop.eup %2158  ;;  %2047 = vmatprep.subr.mxu0 %v2302_v0 }
 0x39f   : > { %v1124_v30 = vmul.f32 %v2159_v29, %v2151_v14  ;;  %v1641_v29 = vld [vmem:[%s2834_s9 + $0x18] sm:$0xff] }
 0x3a1   : > { %2035 = vmatmul.mubr.msk.f32.vlgmr.msra.gmra.mxu1 %vm775_vm2, %v1124_v30  ;;  %v1640_v30 = vld [vmem:[%s2834_s9 + $0x10] sm:$0xff] }
 0x3a2   : > { %v2161_v32 = vpop.eup %2160  ;;  %2043 = vmatpush3.msra.mxu1 %v773_v31  ;;  %2044 = vmatprep.mubr.msk.f32.mxu1 %vm2303_vm0, %v2302_v0  ;;  %v1639_v31 = vld [vmem:[%s2834_s9 + $0x8] sm:$0xff] }
 0x3a3   : > { %v1125_v33 = vmul.f32 %v2161_v32, %v2153_v16  ;;  %2058 = vmatprep.subr.mxu1 %v2302_v0  ;;  %v1541_v16 = vrot.slane %v2624_v21, %v1540_v15  ;;  %v1638_v32 = vld [vmem:[%s2834_s9] sm:$0xff] }
 0x3a5   : > { %2040 = vmatmul.mubr.msk.f32.vlgmr.msra.gmra.mxu0 %vm775_vm2, %v1125_v33  ;;  %v1916_v33 = vld [vmem:[%s2835_s10] ss:$0 sm:$0xff] }
 0x3a6   : > { %v2163_v34 = vpop.eup %2162  ;;  %2055 = vmatprep.mubr.msk.f32.mxu0 %vm2303_vm0, %v2302_v0  ;;  %2048 = vmatpush3.msra.mxu0 %v1439_v38 }
 0x3a7   : > { %v1126_v35 = vmul.f32 %v2163_v34, %v2155_v19  ;;  %2049 = vmatprep.subr.mxu0 %v2302_v0 }
 0x3a8   : > { %2050 = vmatpush3.msra.mxu0 %v1438_v39 }
 0x3a9   : > { %2045 = vmatmul.mubr.msk.f32.vlgmr.msra.gmra.mxu1 %vm775_vm2, %v1126_v35  ;;  %2051 = vmatprep.subr.mxu0 %v2302_v0 }
 0x3aa   : > { %2066 = vmatprep.mubr.msk.f32.mxu1 %vm2303_vm0, %v2302_v0  ;;  %2052 = vmatpush3.msra.mxu0 %v1437_v40 }
 0x3ab   : > { %2053 = vmatprep.subr.mxu0 %v2302_v0  ;;  %2059 = vmatpush3.msra.mxu1 %v1552_v3 }
 0x3ac   : > { %2054 = vmatpush3.msra.mxu0 %v1436_v41  ;;  %2060 = vmatprep.subr.mxu1 %v2302_v0 }
 0x3ad   : > { %2069 = vmatprep.subr.mxu0 %v2302_v0  ;;  %2061 = vmatpush3.msra.mxu1 %v1551_v4 }
 0x3ae   : > { %2062 = vmatprep.subr.mxu1 %v2302_v0 }
 0x3f9   : > { %v1196_v36 = vpop.f32.mrf.mxu0 }
 0x3fb   : > { %v2031_v37 = vpop.f32.mrf.mxu0 }
 0x461   : > { %v1269_v42 = vpop.f32.mrf.mxu1 }
 0x462   : > { %1420 = vrot.lane.b32.xlu1 %v1269_v42, %s2308_s29  ;;  %v1648_v42 = vsub.s32 4, %v2616_v17  ;;  %s2311_s29 = smov [#allocation7]  }
 0x463   : > { %v2036_v43 = vpop.f32.mrf.mxu1 }
 0x465   : > { %v1342_v44 = vpop.f32.mrf.mxu0 }
 0x466   : > { %1424 = vrot.lane.b32.xlu0 %v1342_v44, %s2309_s30  ;;  %s2234_s30 = sshll.u32 %s2311_s29, 4  ;;  %s2235_s30 = int_to_ptr.vmem [resolvable:$false] %s2234_s30 }
 0x467   : > { %v2041_v45 = vpop.f32.mrf.mxu0  ;;  %s2236_s25 = scalar_lea.vmem %s2235_s30, 256  ;;  %p2237_p2 = scmp.lt.s32.totalorder %s1771_s17, %s2235_s30 }
 0x468   : > { %p2238_p4 = scmp.lt.s32.totalorder %s2236_s25, %s2230_s23 }
 0x469   : > { %v1415_v46 = vpop.f32.mrf.mxu1 }
 0x46a   : > { %1428 = vrot.lane.b32.xlu1 %v1415_v46, %s2310_s18  ;;  %p2239_p5 = por %p2238_p4, %p2237_p2 }
 0x46b   : > { %v2046_v47 = vpop.f32.mrf.mxu1 }
 0x46c   : > { %p2240_p9 = pnand %p2239_p5, %p2233_p10 }
 0x4d4   : > { %v1421_v48 = vpop.permute.xlu1 %1420 }
 0x4d5   : > { %v1431_v50 = vsel %vm775_vm2, %v1196_v36, %v1421_v48 }
 0x4d8   : > { %v1425_v49 = vpop.permute.xlu0 %1424 }
 0x4d9   : > { %v1433_v51 = vsel %vm1432_vm5, %v1431_v50, %v1425_v49 }
 0x4dc   : > { %v1429_v52 = vpop.permute.xlu1 %1428 }
 0x4dd   : > { %v1435_v53 = vsel %vm1434_vm6, %v1433_v51, %v1429_v52 }
 0x4de   : > { %2056 = vmatmul.mubr.msk.f32.vlgmr.msra.gmra.mxu0 %vm515_vm1, %v1435_v53 }
 0x4df   : > { %2085 = vmatprep.mubr.msk.f32.mxu0 %vm2303_vm0, %v2302_v0  ;;  %2070 = vmatpush3.msra.mxu0 %v1645_v25 }
 0x4e0   : > { %2071 = vmatprep.subr.mxu0 %v2302_v0 }
 0x4e1   : > { %2072 = vmatpush3.msra.mxu0 %v1644_v26 }
 0x4e2   : > { %2073 = vmatprep.subr.mxu0 %v2302_v0 }
 0x4e3   : > { %2074 = vmatpush3.msra.mxu0 %v1643_v27 }
 0x4e4   : > { %2075 = vmatprep.subr.mxu0 %v2302_v0 }
 0x4e5   : > { %2076 = vmatpush3.msra.mxu0 %v1642_v28 }
 0x4e6   : > { %2077 = vmatprep.subr.mxu0 %v2302_v0 }
 0x4e7   : > { %2078 = vmatpush3.msra.mxu0 %v1641_v29 }
 0x4e8   : > { %2079 = vmatprep.subr.mxu0 %v2302_v0 }
 0x4e9   : > { %2080 = vmatpush3.msra.mxu0 %v1640_v30 }
 0x4ea   : > { %2081 = vmatprep.subr.mxu0 %v2302_v0 }
 0x4eb   : > { %2082 = vmatpush3.msra.mxu0 %v1639_v31 }
 0x4ec   : > { %2083 = vmatprep.subr.mxu0 %v2302_v0 }
 0x4ed   : > { %2084 = vmatpush3.msra.mxu0 %v1638_v32 }
 0x59e   : > { %v1513_v56 = vpop.f32.mrf.mxu0 }
 0x59f   : > { %v1514_v57 = vadd.f32 %v1513_v56, %v1443_v55 }
 0x5a0   : > { %v2057_v58 = vpop.f32.mrf.mxu0 }
 0x5a1   : > { %v1517_v59 = vadd.f32 %v1514_v57, %v2568_v5  ;;  %v1550_v5 = vld [vmem:[%s2833_s8 + $0x8] sm:$0xff] }
 0x5a2   : > { %2063 = vmatpush3.msra.mxu1 %v1550_v5 }
 0x5a3   : > { %v1518_v60 = vsel %vm515_vm1, %v1517_v59, 0.0  ;;  %2064 = vmatprep.subr.mxu1 %v2302_v0  ;;  %v1649_v0 = vrot.slane %v2624_v21, %v1648_v42 }
 0x5a4   : > { %1519 = vadd.xlane.f32.xlu0 %v1518_v60  ;;  %2065 = vmatpush3.msra.mxu1 %v1549_v6 }
 0x62d   : > { %v1520_v61 = vpop.xlane.xlu0 %1519 }
 0x62e   : > { %v1522_v62 = vmul.f32 0.03125, %v1520_v61  ;;  %v1746_v61 = vsub.s32 7, %v2616_v17 }
 0x630   : > { %v1523_v63 = vsub.f32 %v1517_v59, %v1522_v62  ;;  %v1747_v62 = vrot.slane %v2624_v21, %v1746_v61 }
 0x632   : > { %v1524_v1 = vmul.f32 %v1523_v63, %v1523_v63  ;;  %v1542_v19 = vmul.f32 %v1541_v16, %v1523_v63 }
 0x634   : > { %v1525_v2 = vsel %vm515_vm1, %v1524_v1, 0.0 }
 0x635   : > { %1526 = vadd.xlane.f32.xlu1 %v1525_v2  ;;  %v1919_v2 = vld [vmem:[%s2836_s11 + $0x8] ss:$0 sm:$0xff] }
 0x6be   : > { %v1527_v7 = vpop.xlane.xlu1 %1526 }
 0x6bf   : > { %v1528_v8 = vmul.f32 0.032258064, %v1527_v7 }
 0x6c1   : > { %2164 = vrsqrt.f32 %v1528_v8  ;;  %vm1531_vm7 = vcmp.eq.f32.partialorder %v1528_v8, inf  ;;  %v1534_v11 = vand.u32 2147483648, %v1528_v8  ;;  %vm1533_vm8 = vcmp.eq.f32.partialorder %v1528_v8, 0.0 }
 0x6ce   : > { %v2165_v9 = vpop.eup %2164 }
 0x6cf   : > { %v1530_v10 = vmul.f32 %v2165_v9, %v1528_v8 }
 0x6d1   : > { %v1532_v12 = vsel %vm1531_vm7, %v1528_v8, %v1530_v10 }
 0x6d2   : > { %v1535_v13 = vsel %vm1533_vm8, %v1534_v11, %v1532_v12 }
 0x6d3   : > { %v1536_v14 = vadd.f32 1e-06, %v1535_v13 }
 0x6d5   : > { %2166 = vrcp.f32 %v1536_v14 }
 0x6e2   : > { %v2167_v22 = vpop.eup %2166 }
 0x6e3   : > { %v1543_v23 = vmul.f32 %v2167_v22, %v1542_v19 }
 0x6e5   : > { %v1548_v24 = vadd.f32 %v1547_v20, %v1543_v23 }
 0x6e7   : > { %2067 = vmatmul.mubr.msk.f32.vlgmr.msra.gmra.mxu1 %vm515_vm1, %v1548_v24 }
 0x7a7   : > { %v1629_v34 = vpop.f32.mrf.mxu1 }
 0x7a8   : > { %v1630_v35 = vadd.f32 %v1916_v33, %v1629_v34 }
 0x7a9   : > { %v2068_v36 = vpop.f32.mrf.mxu1 }
 0x7aa   : > { %v1634_v37 = vmul.f32 0.70710677, %v1630_v35  ;;  %v1633_v39 = vmul.f32 0.5, %v1630_v35 }
 0x7ac   : > { %2168 = verf.f32 %v1634_v37 }
 0x7b9   : > { %v2169_v38 = vpop.eup %2168 }
 0x7ba   : > { %v1636_v40 = vadd.f32 1.0, %v2169_v38 }
 0x7bc   : > { %v1637_v41 = vmul.f32 %v1636_v40, %v1633_v39 }
 0x7be   : > { %2086 = vmatmul.mubr.msk.f32.vlgmr.msra.gmra.mxu0 %vm1650_vm9, %v1637_v41 }
 0x87e   : > { %v1720_v43 = vpop.f32.mrf.mxu0 }
 0x87f   : > { %v1721_v44 = vadd.f32 %v1720_v43, %v1649_v0 }
 0x880   : > { %v2087_v45 = vpop.f32.mrf.mxu0 }
 0x881   : > { %v1724_v46 = vadd.f32 %v1721_v44, %v1548_v24 }
 0x883   : > { %v1725_v47 = vsel %vm515_vm1, %v1724_v46, 0.0 }
 0x884   : > { %1726 = vadd.xlane.f32.xlu0 %v1725_v47 }
 0x90d   : > { %v1727_v48 = vpop.xlane.xlu0 %1726 }
 0x90e   : > { %v1728_v49 = vmul.f32 0.03125, %v1727_v48 }
 0x910   : > { %v1729_v50 = vsub.f32 %v1724_v46, %v1728_v49 }
 0x912   : > { %v1730_v51 = vmul.f32 %v1729_v50, %v1729_v50  ;;  %v1748_v63 = vmul.f32 %v1747_v62, %v1729_v50 }
 0x914   : > { %v1731_v52 = vsel %vm515_vm1, %v1730_v51, 0.0 }
 0x915   : > { %1732 = vadd.xlane.f32.xlu0 %v1731_v52 }
 0x99e   : > { %v1733_v53 = vpop.xlane.xlu0 %1732 }
 0x99f   : > { %v1734_v54 = vmul.f32 0.032258064, %v1733_v53 }
 0x9a1   : > { %2170 = vrsqrt.f32 %v1734_v54  ;;  %vm1737_vm10 = vcmp.eq.f32.partialorder %v1734_v54, inf  ;;  %v1740_v57 = vand.u32 2147483648, %v1734_v54  ;;  %vm1739_vm11 = vcmp.eq.f32.partialorder %v1734_v54, 0.0 }
 0x9ae   : > { %v2171_v55 = vpop.eup %2170 }
 0x9af   : > { %v1736_v56 = vmul.f32 %v2171_v55, %v1734_v54 }
 0x9b1   : > { %v1738_v58 = vsel %vm1737_vm10, %v1734_v54, %v1736_v56 }
 0x9b2   : > { %v1741_v59 = vsel %vm1739_vm11, %v1740_v57, %v1738_v58 }
 0x9b3   : > { %v1742_v60 = vadd.f32 1e-06, %v1741_v59 }
 0x9b5   : > { %2172 = vrcp.f32 %v1742_v60 }
 0x9c2   : > { %v2173_v1 = vpop.eup %2172 }
 0x9c3   : > { %v1749_v3 = vmul.f32 %v2173_v1, %v1748_v63 }
 0x9c5   : > { %v1754_v4 = vadd.f32 %v1919_v2, %v1749_v3 }
 0x9c7   : > { %1755 = vst.msk [vmem:[%s491_s14] sm:$0xff] %vm515_vm1, %v1754_v4 }
 0x9c8   : > { %2243 = shalt.err (!%p2240_p9)
}
 0x9c9   : > { %s2244_s20 = scalar_lea.hbm %s1768_s16, 128  ;;  %s2248_s26 = scalar_lea.hbm %s2837_s12, 256 }
 0x9ca   : > { %p2245_p0 = scmp.ne.s32.totalorder %s1768_s16, %s2244_s20  ;;  %p2249_p1 = scmp.lt.s32.totalorder %s1768_s16, %s2837_s12 }
 0x9cb   : > { %p2250_p6 = scmp.lt.s32.totalorder %s2248_s26, %s2244_s20 }
 0x9cc   : > { %p2246_p11 = pnand %p2245_p0, %p2868_p7 }
 0x9cd   : > { %p2251_p13 = por %p2250_p6, %p2249_p1 }
 0x9ce   : > { %p2247_p12 = pneg %p2246_p11 }
 0x9d0   : > { %p2252_p3 = pnand %p2251_p13, %p2247_p12 }
 0x9d2   : > { %2255 = shalt.err (!%p2252_p3)
}
 0x9d3   : > { %2092 = dma.vmem_to_hbm [thread:$0]  (%p2868_p7), %s1771_s17, 128, %s1768_s16, %s1757_s27  }
 0x9d4 PF: > { %s2869_s14 = sld [smem:[#allocation11_spill]]  ;;  %p2872_p10 = scmp.ge.s32.totalorder %s2298_s24, 2 }
 0x9d5   : > { %s2870_s13 = sld [smem:[#allocation15_spill]] }
 0x9da   : > { %s1782_s1 = sand.u32 1, %s2869_s14  }
 0x9db   : > { %p2871_p8 = scmp.ne.s32.totalorder %s2870_s13, 0  ;;  %s1783_s23 = scalar_lea.sflag [#allocation4], %s1782_s1 }
 0x9dd   : > { %p2102_p2 = pnand %p2872_p10, %p2871_p8 }
 0x9df   : > { %p2103_p4 = pneg %p2102_p2 }
 0x9e1   : > { %2281 = dma.done.wait (%p2103_p4), %s1783_s23, 128  }
 0x9e2   : > { %2283 = vsyncadd (%p2103_p4), %s1783_s23, 4294967168  ;;  %s2873_s24 = sld [smem:[#allocation13_spill]]  ;;  %s2876_s21 = smov %s2290_s22 }
 0x9e3   : > { %s2874_s29 = sld [smem:[#allocation12_spill]] }
 0x9e4   : > { %s2875_s23 = sld [smem:[#allocation14_spill]] }
 0x9e8   : > { %p28_p5 = scmp.ge.s32.totalorder %s2873_s24, 4  }
 0x9e9   : > { %s2877_s22 = smov %s2874_s29 }
 0x9ea   :  { %30 = sbr.rel (!%p28_p5) target bundleno = 9 (0x9), region = 132 }
 0x9ef   :  { %1788 = vsyncpa [#allocation3], 1 }
 0x9f0   :  { %1790 = vsyncpa [#allocation3 + $0x1], 1 }
 0x9f1   :  { %1791 = vsyncpa [#allocation6], 1 }
 0x9f2   :  { %1793 = vsyncpa [#allocation6 + $0x1], 1 }
 0x9f3   :  { %1794 = vsyncpa [#allocation4], 1 }
 0x9f4   :  { %1796 = vsyncpa [#allocation4 + $0x1], 1 }

</bundles_post_ra>
